<compile_context>
chip_gen: v6e
topology: v6e:2x2x1
jax: 0.10.0
libtpu: 0.0.40
codegen_flags: <defaults>
</compile_context>

<pallas_src>
import functools

import jax
import jax.numpy as jnp
from jax.experimental import pallas as pl

CPAD = 128  # classifier logits padded to a full lane width; wrapper slices to 13


# ----------------------------------------------------------------------------
# Fused Pallas kernel: embeddings-LN -> L x encoder layer -> pooler -> classifier
# ----------------------------------------------------------------------------
def _fused_bert_kernel(
    x_ref, mask_ref, emb_g_ref, emb_b_ref,
    wqkv_ref, bqkv_ref, wo_ref, bo_ref, ln1_g_ref, ln1_b_ref,
    w1_ref, b1_ref, w2_ref, b2_ref, ln2_g_ref, ln2_b_ref,
    wp_ref, bp_ref, wc_ref, bc_ref,
    o_ref,
    *, B, S, nH, dH, n_layers):
    f32 = jnp.float32
    bf16 = jnp.bfloat16
    H = nH * dH

    def mm(a, w):
        # bf16 MXU matmul, f32 accumulation (weights are already bf16)
        return jnp.dot(a.astype(bf16), w, preferred_element_type=f32)

    def layernorm(y, g, b):
        mu = jnp.mean(y, axis=-1, keepdims=True)
        var = jnp.mean(jnp.square(y - mu), axis=-1, keepdims=True)
        return (y - mu) * jax.lax.rsqrt(var + 1e-12) * g + b

    def head_stack(t):
        # [M, H] -> [B*nH*S, dH], row index = (b*nH + h)*S + s
        parts = [t[b * S:(b + 1) * S, h * dH:(h + 1) * dH]
                 for b in range(B) for h in range(nH)]
        return jnp.concatenate(parts, axis=0)

    def head_unstack(t):
        # [B*nH*S, dH] -> [M, H]
        rows = []
        for b in range(B):
            heads = [t[(b * nH + h) * S:(b * nH + h + 1) * S, :]
                     for h in range(nH)]
            rows.append(jnp.concatenate(heads, axis=1))          # [S, H]
        return jnp.concatenate(rows, axis=0)                      # [M, H]

    # --- embedding LayerNorm ---
    x = layernorm(x_ref[...].astype(f32), emb_g_ref[...], emb_b_ref[...])  # [M, H]

    # block-diagonal + padding additive mask, precomputed in the wrapper (f32)
    bigmask = mask_ref[...]                                       # [BHS, BHS]

    # --- encoder layers (static unroll; all activations stay in VMEM) ---
    for l in range(n_layers):
        # fused QKV projection (1/sqrt(dH) already folded into the Q columns),
        # single bf16 cast for the whole layer's Q/K/V.
        qkv = (mm(x, wqkv_ref[l]) + bqkv_ref[l]).astype(bf16)     # [M, 3H]
        q_st = head_stack(qkv[:, 0 * H:1 * H])                    # [BHS, dH]
        k_st = head_stack(qkv[:, 1 * H:2 * H])
        v_st = head_stack(qkv[:, 2 * H:3 * H])

        # one block-diagonal score matmul for all (batch, head) pairs
        s = jax.lax.dot_general(q_st, k_st, (((1,), (1,)), ((), ())),
                                preferred_element_type=f32)       # [BHS, BHS]
        s = s + bigmask
        s = s - jnp.max(s, axis=-1, keepdims=True)
        p = jnp.exp(s)
        p = p / jnp.sum(p, axis=-1, keepdims=True)
        ctx = head_unstack(jnp.dot(p.astype(bf16), v_st,
                                   preferred_element_type=f32))   # [M, H]

        attn = mm(ctx, wo_ref[l]) + bo_ref[l]                     # [M, H]
        x = layernorm(attn + x, ln1_g_ref[l], ln1_b_ref[l])

        ffn = mm(x, w1_ref[l]) + b1_ref[l]                        # [M, I]
        # TODO(synk): HF BERT uses exact erf GELU; tanh approximation used here.
        ffn = jax.nn.gelu(ffn, approximate=True)
        ffn = mm(ffn, w2_ref[l]) + b2_ref[l]                      # [M, H]
        x = layernorm(ffn + x, ln2_g_ref[l], ln2_b_ref[l])

    # --- pooler (dense + tanh on CLS rows) + dropout(eval=identity) + classifier ---
    cls = jnp.concatenate([x[b * S:b * S + 1, :] for b in range(B)], axis=0)  # [B, H]
    pooled = jnp.tanh(mm(cls, wp_ref[...]) + bp_ref[...])                     # [B, H]
    logits = mm(pooled, wc_ref[...]) + bc_ref[...]                            # [B, CPAD]
    o_ref[...] = logits.astype(o_ref.dtype)     # single lane-dense store


# ----------------------------------------------------------------------------
# Synthetic (deterministic) BERT-style parameters
# ----------------------------------------------------------------------------
def init_params(key, *, vocab=100, max_pos=128, type_vocab=2, hidden=32,
                heads=4, layers=2, intermediate=64, num_classes=13):
    keys = iter(jax.random.split(key, 64))

    def w(shape, scale=0.02):
        return jax.random.normal(next(keys), shape, jnp.float32) * scale

    params = {
        "num_heads": heads,
        "word_emb": w((vocab, hidden)),
        "pos_emb": w((max_pos, hidden)),
        "type_emb": w((type_vocab, hidden)),
        "emb_ln_g": jnp.ones((hidden,), jnp.float32),
        "emb_ln_b": jnp.zeros((hidden,), jnp.float32),
        "layers": [],
        "wp": w((hidden, hidden)), "bp": jnp.zeros((hidden,), jnp.float32),
        "wc": w((hidden, num_classes)), "bc": jnp.zeros((num_classes,), jnp.float32),
    }
    for _ in range(layers):
        params["layers"].append({
            "wq": w((hidden, hidden)), "bq": jnp.zeros((hidden,), jnp.float32),
            "wk": w((hidden, hidden)), "bk": jnp.zeros((hidden,), jnp.float32),
            "wv": w((hidden, hidden)), "bv": jnp.zeros((hidden,), jnp.float32),
            "wo": w((hidden, hidden)), "bo": jnp.zeros((hidden,), jnp.float32),
            "ln1_g": jnp.ones((hidden,), jnp.float32),
            "ln1_b": jnp.zeros((hidden,), jnp.float32),
            "w1": w((hidden, intermediate)), "b1": jnp.zeros((intermediate,), jnp.float32),
            "w2": w((intermediate, hidden)), "b2": jnp.zeros((hidden,), jnp.float32),
            "ln2_g": jnp.ones((hidden,), jnp.float32),
            "ln2_b": jnp.zeros((hidden,), jnp.float32),
        })
    return params


def pack_params(params):
    """Merge QKV (with 1/sqrt(dH) folded into the Q slice), stack per-layer
    weights, cast matmul weights to bf16, pad classifier to a lane-dense width."""
    bf16, f32 = jnp.bfloat16, jnp.float32
    layers = params["layers"]
    H = params["word_emb"].shape[1]
    nH = params["num_heads"]
    dH = H // nH
    scale = 1.0 / (dH ** 0.5)
    C = params["bc"].shape[0]
    return {
        "num_heads": nH,
        "num_layers": len(layers),
        "num_classes": C,
        "word_emb": params["word_emb"],
        "pos_emb": params["pos_emb"],
        "type_emb": params["type_emb"],
        "emb_ln_g": params["emb_ln_g"].reshape(1, H).astype(f32),
        "emb_ln_b": params["emb_ln_b"].reshape(1, H).astype(f32),
        "wqkv": jnp.stack([jnp.concatenate([l["wq"] * scale, l["wk"], l["wv"]], axis=1)
                           for l in layers]).astype(bf16),                 # [L, H, 3H]
        "bqkv": jnp.stack([jnp.concatenate([l["bq"] * scale, l["bk"], l["bv"]])[None, :]
                           for l in layers]).astype(f32),                  # [L, 1, 3H]
        "wo": jnp.stack([l["wo"] for l in layers]).astype(bf16),
        "bo": jnp.stack([l["bo"][None, :] for l in layers]).astype(f32),
        "ln1_g": jnp.stack([l["ln1_g"][None, :] for l in layers]).astype(f32),
        "ln1_b": jnp.stack([l["ln1_b"][None, :] for l in layers]).astype(f32),
        "w1": jnp.stack([l["w1"] for l in layers]).astype(bf16),
        "b1": jnp.stack([l["b1"][None, :] for l in layers]).astype(f32),
        "w2": jnp.stack([l["w2"] for l in layers]).astype(bf16),
        "b2": jnp.stack([l["b2"][None, :] for l in layers]).astype(f32),
        "ln2_g": jnp.stack([l["ln2_g"][None, :] for l in layers]).astype(f32),
        "ln2_b": jnp.stack([l["ln2_b"][None, :] for l in layers]).astype(f32),
        "wp": params["wp"].astype(bf16),
        "bp": params["bp"].reshape(1, H).astype(f32),
        "wc": jnp.zeros((H, CPAD), f32).at[:, :C].set(params["wc"]).astype(bf16),
        "bc": jnp.zeros((1, CPAD), f32).at[:, :C].set(params["bc"][None, :]),
    }


# ----------------------------------------------------------------------------
# Forward pass (mirrors DuyguAnalizi.forward, eval mode)
# ----------------------------------------------------------------------------
def duygu_analizi_forward(packed, input_ids, attention_mask):
    B, S = input_ids.shape
    H = packed["word_emb"].shape[1]
    nH = packed["num_heads"]
    dH = H // nH
    L = packed["num_layers"]
    C = packed["num_classes"]
    M = B * S
    BHS = B * nH * S
    f32 = jnp.float32

    # --- BERT embeddings (table gather = glue, plain JAX) ---
    # TODO(synk): token_type_ids hard-coded to type 0 (reference calls BERT without them).
    x_emb = (packed["word_emb"][input_ids]
             + packed["pos_emb"][:S][None, :, :]
             + packed["type_emb"][0][None, None, :]).reshape(M, H).astype(f32)

    # --- block-diagonal additive attention mask over stacked (batch, head) rows ---
    # key additive value: 0 where attended, -1e9 where padded
    key_add = (1.0 - attention_mask.astype(f32)) * -1e9                 # [B, S]
    key_vec = jnp.repeat(key_add, nH, axis=0).reshape(BHS)              # [(b*nH+h)*S+s]
    allow = jnp.kron(jnp.eye(B * nH, dtype=f32),
                     jnp.ones((S, S), f32))                             # [BHS, BHS]
    bigmask = jnp.where(allow > 0.5, key_vec[None, :], f32(-1e9))       # [BHS, BHS]

    kernel = functools.partial(_fused_bert_kernel,
                               B=B, S=S, nH=nH, dH=dH, n_layers=L)
    logits_pad = pl.pallas_call(
        kernel,
        out_shape=jax.ShapeDtypeStruct((B, CPAD), jnp.float32),
    )(x_emb, bigmask,
      packed["emb_ln_g"], packed["emb_ln_b"],
      packed["wqkv"], packed["bqkv"], packed["wo"], packed["bo"],
      packed["ln1_g"], packed["ln1_b"],
      packed["w1"], packed["b1"], packed["w2"], packed["b2"],
      packed["ln2_g"], packed["ln2_b"],
      packed["wp"], packed["bp"], packed["wc"], packed["bc"])

    return logits_pad[:, :C]


# ----------------------------------------------------------------------------
if __name__ == "__main__":
    key = jax.random.PRNGKey(0)
    k_param, k_ids = jax.random.split(key)

    B, S = 2, 8
    params = init_params(k_param, hidden=32, heads=4, layers=2,
                         intermediate=64, vocab=100, num_classes=13)
    packed = pack_params(params)

    input_ids = jax.random.randint(k_ids, (B, S), 0, 100, dtype=jnp.int32)
    attention_mask = jnp.array([[1, 1, 1, 1, 1, 1, 0, 0],
                                [1, 1, 1, 1, 0, 0, 0, 0]], dtype=jnp.int32)

    logits = duygu_analizi_forward(packed, input_ids, attention_mask)
    logits = jax.block_until_ready(logits)
    assert logits.shape == (B, 13)
    print("KERNEL_OK")
</pallas_src>

<mosaic_0001>
module attributes {stable_mosaic.version = 11 : i64} {
  func.func @_fused_bert_kernel(%arg0: memref<16x32xf32, #tpu.memory_space<vmem>>, %arg1: memref<64x64xf32, #tpu.memory_space<vmem>>, %arg2: memref<1x32xf32, #tpu.memory_space<vmem>>, %arg3: memref<1x32xf32, #tpu.memory_space<vmem>>, %arg4: memref<2x32x96xbf16, #tpu.memory_space<vmem>>, %arg5: memref<2x1x96xf32, #tpu.memory_space<vmem>>, %arg6: memref<2x32x32xbf16, #tpu.memory_space<vmem>>, %arg7: memref<2x1x32xf32, #tpu.memory_space<vmem>>, %arg8: memref<2x1x32xf32, #tpu.memory_space<vmem>>, %arg9: memref<2x1x32xf32, #tpu.memory_space<vmem>>, %arg10: memref<2x32x64xbf16, #tpu.memory_space<vmem>>, %arg11: memref<2x1x64xf32, #tpu.memory_space<vmem>>, %arg12: memref<2x64x32xbf16, #tpu.memory_space<vmem>>, %arg13: memref<2x1x32xf32, #tpu.memory_space<vmem>>, %arg14: memref<2x1x32xf32, #tpu.memory_space<vmem>>, %arg15: memref<2x1x32xf32, #tpu.memory_space<vmem>>, %arg16: memref<32x32xbf16, #tpu.memory_space<vmem>>, %arg17: memref<1x32xf32, #tpu.memory_space<vmem>>, %arg18: memref<32x128xbf16, #tpu.memory_space<vmem>>, %arg19: memref<1x128xf32, #tpu.memory_space<vmem>>, %arg20: memref<2x128xf32, #tpu.memory_space<vmem>>) attributes {dimension_semantics = [], scalar_prefetch = 0 : i64, scratch_operands = 0 : i64, tpu.core_type = #tpu.core_type<tc>} {
    %c0 = arith.constant 0 : index
    %c0_0 = arith.constant 0 : index
    %0 = vector.load %arg0[%c0, %c0_0] : memref<16x32xf32, #tpu.memory_space<vmem>>, vector<16x32xf32>
    %c0_1 = arith.constant 0 : index
    %c0_2 = arith.constant 0 : index
    %1 = vector.load %arg2[%c0_1, %c0_2] : memref<1x32xf32, #tpu.memory_space<vmem>>, vector<1x32xf32>
    %c0_3 = arith.constant 0 : index
    %c0_4 = arith.constant 0 : index
    %2 = vector.load %arg3[%c0_3, %c0_4] : memref<1x32xf32, #tpu.memory_space<vmem>>, vector<1x32xf32>
    %cst = arith.constant dense<0.000000e+00> : vector<16xf32>
    %3 = vector.multi_reduction <add>, %0, %cst [1] : vector<16x32xf32> to vector<16xf32>
    %4 = vector.shape_cast %3 : vector<16xf32> to vector<16x1xf32>
    %cst_5 = arith.constant 3.200000e+01 : f32
    %5 = vector.broadcast %cst_5 : f32 to vector<16x1xf32>
    %6 = arith.divf %4, %5 : vector<16x1xf32>
    %7 = vector.broadcast %6 : vector<16x1xf32> to vector<16x32xf32>
    %8 = arith.subf %0, %7 : vector<16x32xf32>
    %9 = arith.mulf %8, %8 : vector<16x32xf32>
    %cst_6 = arith.constant dense<0.000000e+00> : vector<16xf32>
    %10 = vector.multi_reduction <add>, %9, %cst_6 [1] : vector<16x32xf32> to vector<16xf32>
    %11 = vector.shape_cast %10 : vector<16xf32> to vector<16x1xf32>
    %cst_7 = arith.constant 3.200000e+01 : f32
    %12 = vector.broadcast %cst_7 : f32 to vector<16x1xf32>
    %13 = arith.divf %11, %12 : vector<16x1xf32>
    %14 = vector.broadcast %6 : vector<16x1xf32> to vector<16x32xf32>
    %15 = arith.subf %0, %14 : vector<16x32xf32>
    %cst_8 = arith.constant 9.99999996E-13 : f32
    %16 = vector.broadcast %cst_8 : f32 to vector<16x1xf32>
    %17 = arith.addf %13, %16 : vector<16x1xf32>
    %18 = math.rsqrt %17 : vector<16x1xf32>
    %19 = vector.broadcast %18 : vector<16x1xf32> to vector<16x32xf32>
    %20 = arith.mulf %15, %19 : vector<16x32xf32>
    %21 = vector.broadcast %1 : vector<1x32xf32> to vector<16x32xf32>
    %22 = arith.mulf %20, %21 : vector<16x32xf32>
    %23 = vector.broadcast %2 : vector<1x32xf32> to vector<16x32xf32>
    %24 = arith.addf %22, %23 : vector<16x32xf32>
    %c0_9 = arith.constant 0 : index
    %c0_10 = arith.constant 0 : index
    %25 = vector.load %arg1[%c0_9, %c0_10] : memref<64x64xf32, #tpu.memory_space<vmem>>, vector<64x64xf32>
    %c0_11 = arith.constant 0 : index
    %c0_12 = arith.constant 0 : index
    %c0_13 = arith.constant 0 : index
    %26 = vector.load %arg4[%c0_11, %c0_12, %c0_13] : memref<2x32x96xbf16, #tpu.memory_space<vmem>>, vector<1x32x96xbf16>
    %27 = vector.shape_cast %26 : vector<1x32x96xbf16> to vector<32x96xbf16>
    %28 = arith.truncf %24 : vector<16x32xf32> to vector<16x32xbf16>
    %cst_14 = arith.constant dense<0.000000e+00> : vector<16x96xf32>
    %29 = tpu.matmul %28, %27, %cst_14 {dimension_numbers = #tpu.dot_dimension_numbers<[1], [0], [0], [1], [0, 0, 1, 1], [], []>} : vector<16x32xbf16>, vector<32x96xbf16>, vector<16x96xf32> -> vector<16x96xf32>
    %c0_15 = arith.constant 0 : index
    %c0_16 = arith.constant 0 : index
    %c0_17 = arith.constant 0 : index
    %30 = vector.load %arg5[%c0_15, %c0_16, %c0_17] : memref<2x1x96xf32, #tpu.memory_space<vmem>>, vector<1x1x96xf32>
    %31 = vector.shape_cast %30 : vector<1x1x96xf32> to vector<1x96xf32>
    %32 = vector.broadcast %31 : vector<1x96xf32> to vector<16x96xf32>
    %33 = arith.addf %29, %32 : vector<16x96xf32>
    %34 = arith.truncf %33 : vector<16x96xf32> to vector<16x96xbf16>
    %35 = vector.extract_strided_slice %34 {offsets = [0, 0], sizes = [16, 32], strides = [1, 1]} : vector<16x96xbf16> to vector<16x32xbf16>
    %36 = vector.extract_strided_slice %35 {offsets = [0, 0], sizes = [8, 8], strides = [1, 1]} : vector<16x32xbf16> to vector<8x8xbf16>
    %37 = vector.extract_strided_slice %35 {offsets = [0, 8], sizes = [8, 8], strides = [1, 1]} : vector<16x32xbf16> to vector<8x8xbf16>
    %38 = vector.extract_strided_slice %35 {offsets = [0, 16], sizes = [8, 8], strides = [1, 1]} : vector<16x32xbf16> to vector<8x8xbf16>
    %39 = vector.extract_strided_slice %35 {offsets = [0, 24], sizes = [8, 8], strides = [1, 1]} : vector<16x32xbf16> to vector<8x8xbf16>
    %40 = vector.extract_strided_slice %35 {offsets = [8, 0], sizes = [8, 8], strides = [1, 1]} : vector<16x32xbf16> to vector<8x8xbf16>
    %41 = vector.extract_strided_slice %35 {offsets = [8, 8], sizes = [8, 8], strides = [1, 1]} : vector<16x32xbf16> to vector<8x8xbf16>
    %42 = vector.extract_strided_slice %35 {offsets = [8, 16], sizes = [8, 8], strides = [1, 1]} : vector<16x32xbf16> to vector<8x8xbf16>
    %43 = vector.extract_strided_slice %35 {offsets = [8, 24], sizes = [8, 8], strides = [1, 1]} : vector<16x32xbf16> to vector<8x8xbf16>
    %44 = tpu.concatenate %36, %37, %38, %39, %40, %41, %42, %43 in 0 : vector<8x8xbf16>, vector<8x8xbf16>, vector<8x8xbf16>, vector<8x8xbf16>, vector<8x8xbf16>, vector<8x8xbf16>, vector<8x8xbf16>, vector<8x8xbf16> -> vector<64x8xbf16>
    %45 = vector.extract_strided_slice %34 {offsets = [0, 32], sizes = [16, 32], strides = [1, 1]} : vector<16x96xbf16> to vector<16x32xbf16>
    %46 = vector.extract_strided_slice %45 {offsets = [0, 0], sizes = [8, 8], strides = [1, 1]} : vector<16x32xbf16> to vector<8x8xbf16>
    %47 = vector.extract_strided_slice %45 {offsets = [0, 8], sizes = [8, 8], strides = [1, 1]} : vector<16x32xbf16> to vector<8x8xbf16>
    %48 = vector.extract_strided_slice %45 {offsets = [0, 16], sizes = [8, 8], strides = [1, 1]} : vector<16x32xbf16> to vector<8x8xbf16>
    %49 = vector.extract_strided_slice %45 {offsets = [0, 24], sizes = [8, 8], strides = [1, 1]} : vector<16x32xbf16> to vector<8x8xbf16>
    %50 = vector.extract_strided_slice %45 {offsets = [8, 0], sizes = [8, 8], strides = [1, 1]} : vector<16x32xbf16> to vector<8x8xbf16>
    %51 = vector.extract_strided_slice %45 {offsets = [8, 8], sizes = [8, 8], strides = [1, 1]} : vector<16x32xbf16> to vector<8x8xbf16>
    %52 = vector.extract_strided_slice %45 {offsets = [8, 16], sizes = [8, 8], strides = [1, 1]} : vector<16x32xbf16> to vector<8x8xbf16>
    %53 = vector.extract_strided_slice %45 {offsets = [8, 24], sizes = [8, 8], strides = [1, 1]} : vector<16x32xbf16> to vector<8x8xbf16>
    %54 = tpu.concatenate %46, %47, %48, %49, %50, %51, %52, %53 in 0 : vector<8x8xbf16>, vector<8x8xbf16>, vector<8x8xbf16>, vector<8x8xbf16>, vector<8x8xbf16>, vector<8x8xbf16>, vector<8x8xbf16>, vector<8x8xbf16> -> vector<64x8xbf16>
    %55 = vector.extract_strided_slice %34 {offsets = [0, 64], sizes = [16, 32], strides = [1, 1]} : vector<16x96xbf16> to vector<16x32xbf16>
    %56 = vector.extract_strided_slice %55 {offsets = [0, 0], sizes = [8, 8], strides = [1, 1]} : vector<16x32xbf16> to vector<8x8xbf16>
    %57 = vector.extract_strided_slice %55 {offsets = [0, 8], sizes = [8, 8], strides = [1, 1]} : vector<16x32xbf16> to vector<8x8xbf16>
    %58 = vector.extract_strided_slice %55 {offsets = [0, 16], sizes = [8, 8], strides = [1, 1]} : vector<16x32xbf16> to vector<8x8xbf16>
    %59 = vector.extract_strided_slice %55 {offsets = [0, 24], sizes = [8, 8], strides = [1, 1]} : vector<16x32xbf16> to vector<8x8xbf16>
    %60 = vector.extract_strided_slice %55 {offsets = [8, 0], sizes = [8, 8], strides = [1, 1]} : vector<16x32xbf16> to vector<8x8xbf16>
    %61 = vector.extract_strided_slice %55 {offsets = [8, 8], sizes = [8, 8], strides = [1, 1]} : vector<16x32xbf16> to vector<8x8xbf16>
    %62 = vector.extract_strided_slice %55 {offsets = [8, 16], sizes = [8, 8], strides = [1, 1]} : vector<16x32xbf16> to vector<8x8xbf16>
    %63 = vector.extract_strided_slice %55 {offsets = [8, 24], sizes = [8, 8], strides = [1, 1]} : vector<16x32xbf16> to vector<8x8xbf16>
    %64 = tpu.concatenate %56, %57, %58, %59, %60, %61, %62, %63 in 0 : vector<8x8xbf16>, vector<8x8xbf16>, vector<8x8xbf16>, vector<8x8xbf16>, vector<8x8xbf16>, vector<8x8xbf16>, vector<8x8xbf16>, vector<8x8xbf16> -> vector<64x8xbf16>
    %cst_18 = arith.constant dense<0.000000e+00> : vector<64x64xf32>
    %65 = tpu.matmul %44, %54, %cst_18 {dimension_numbers = #tpu.dot_dimension_numbers<[1], [1], [0], [0], [0, 0, 1, 0], [], []>} : vector<64x8xbf16>, vector<64x8xbf16>, vector<64x64xf32> -> vector<64x64xf32>
    %66 = arith.addf %65, %25 : vector<64x64xf32>
    %cst_19 = arith.constant dense<0xFF800000> : vector<64xf32>
    %67 = vector.multi_reduction <maximumf>, %66, %cst_19 [1] : vector<64x64xf32> to vector<64xf32>
    %68 = vector.shape_cast %67 : vector<64xf32> to vector<64x1xf32>
    %69 = vector.broadcast %68 : vector<64x1xf32> to vector<64x64xf32>
    %70 = arith.subf %66, %69 : vector<64x64xf32>
    %71 = math.exp %70 : vector<64x64xf32>
    %cst_20 = arith.constant dense<0.000000e+00> : vector<64xf32>
    %72 = vector.multi_reduction <add>, %71, %cst_20 [1] : vector<64x64xf32> to vector<64xf32>
    %73 = vector.shape_cast %72 : vector<64xf32> to vector<64x1xf32>
    %74 = vector.broadcast %73 : vector<64x1xf32> to vector<64x64xf32>
    %75 = arith.divf %71, %74 : vector<64x64xf32>
    %76 = arith.truncf %75 : vector<64x64xf32> to vector<64x64xbf16>
    %cst_21 = arith.constant dense<0.000000e+00> : vector<64x8xf32>
    %77 = tpu.matmul %76, %64, %cst_21 {dimension_numbers = #tpu.dot_dimension_numbers<[1], [0], [0], [1], [0, 0, 1, 1], [], []>} : vector<64x64xbf16>, vector<64x8xbf16>, vector<64x8xf32> -> vector<64x8xf32>
    %78 = vector.extract_strided_slice %77 {offsets = [0, 0], sizes = [8, 8], strides = [1, 1]} : vector<64x8xf32> to vector<8x8xf32>
    %79 = vector.extract_strided_slice %77 {offsets = [8, 0], sizes = [8, 8], strides = [1, 1]} : vector<64x8xf32> to vector<8x8xf32>
    %80 = vector.extract_strided_slice %77 {offsets = [16, 0], sizes = [8, 8], strides = [1, 1]} : vector<64x8xf32> to vector<8x8xf32>
    %81 = vector.extract_strided_slice %77 {offsets = [24, 0], sizes = [8, 8], strides = [1, 1]} : vector<64x8xf32> to vector<8x8xf32>
    %82 = tpu.concatenate %78, %79, %80, %81 in 1 : vector<8x8xf32>, vector<8x8xf32>, vector<8x8xf32>, vector<8x8xf32> -> vector<8x32xf32>
    %83 = vector.extract_strided_slice %77 {offsets = [32, 0], sizes = [8, 8], strides = [1, 1]} : vector<64x8xf32> to vector<8x8xf32>
    %84 = vector.extract_strided_slice %77 {offsets = [40, 0], sizes = [8, 8], strides = [1, 1]} : vector<64x8xf32> to vector<8x8xf32>
    %85 = vector.extract_strided_slice %77 {offsets = [48, 0], sizes = [8, 8], strides = [1, 1]} : vector<64x8xf32> to vector<8x8xf32>
    %86 = vector.extract_strided_slice %77 {offsets = [56, 0], sizes = [8, 8], strides = [1, 1]} : vector<64x8xf32> to vector<8x8xf32>
    %87 = tpu.concatenate %83, %84, %85, %86 in 1 : vector<8x8xf32>, vector<8x8xf32>, vector<8x8xf32>, vector<8x8xf32> -> vector<8x32xf32>
    %88 = tpu.concatenate %82, %87 in 0 : vector<8x32xf32>, vector<8x32xf32> -> vector<16x32xf32>
    %c0_22 = arith.constant 0 : index
    %c0_23 = arith.constant 0 : index
    %c0_24 = arith.constant 0 : index
    %89 = vector.load %arg6[%c0_22, %c0_23, %c0_24] : memref<2x32x32xbf16, #tpu.memory_space<vmem>>, vector<1x32x32xbf16>
    %90 = vector.shape_cast %89 : vector<1x32x32xbf16> to vector<32x32xbf16>
    %91 = arith.truncf %88 : vector<16x32xf32> to vector<16x32xbf16>
    %cst_25 = arith.constant dense<0.000000e+00> : vector<16x32xf32>
    %92 = tpu.matmul %91, %90, %cst_25 {dimension_numbers = #tpu.dot_dimension_numbers<[1], [0], [0], [1], [0, 0, 1, 1], [], []>} : vector<16x32xbf16>, vector<32x32xbf16>, vector<16x32xf32> -> vector<16x32xf32>
    %c0_26 = arith.constant 0 : index
    %c0_27 = arith.constant 0 : index
    %c0_28 = arith.constant 0 : index
    %93 = vector.load %arg7[%c0_26, %c0_27, %c0_28] : memref<2x1x32xf32, #tpu.memory_space<vmem>>, vector<1x1x32xf32>
    %94 = vector.shape_cast %93 : vector<1x1x32xf32> to vector<1x32xf32>
    %95 = vector.broadcast %94 : vector<1x32xf32> to vector<16x32xf32>
    %96 = arith.addf %92, %95 : vector<16x32xf32>
    %97 = arith.addf %96, %24 : vector<16x32xf32>
    %c0_29 = arith.constant 0 : index
    %c0_30 = arith.constant 0 : index
    %c0_31 = arith.constant 0 : index
    %98 = vector.load %arg8[%c0_29, %c0_30, %c0_31] : memref<2x1x32xf32, #tpu.memory_space<vmem>>, vector<1x1x32xf32>
    %99 = vector.shape_cast %98 : vector<1x1x32xf32> to vector<1x32xf32>
    %c0_32 = arith.constant 0 : index
    %c0_33 = arith.constant 0 : index
    %c0_34 = arith.constant 0 : index
    %100 = vector.load %arg9[%c0_32, %c0_33, %c0_34] : memref<2x1x32xf32, #tpu.memory_space<vmem>>, vector<1x1x32xf32>
    %101 = vector.shape_cast %100 : vector<1x1x32xf32> to vector<1x32xf32>
    %cst_35 = arith.constant dense<0.000000e+00> : vector<16xf32>
    %102 = vector.multi_reduction <add>, %97, %cst_35 [1] : vector<16x32xf32> to vector<16xf32>
    %103 = vector.shape_cast %102 : vector<16xf32> to vector<16x1xf32>
    %cst_36 = arith.constant 3.200000e+01 : f32
    %104 = vector.broadcast %cst_36 : f32 to vector<16x1xf32>
    %105 = arith.divf %103, %104 : vector<16x1xf32>
    %106 = vector.broadcast %105 : vector<16x1xf32> to vector<16x32xf32>
    %107 = arith.subf %97, %106 : vector<16x32xf32>
    %108 = arith.mulf %107, %107 : vector<16x32xf32>
    %cst_37 = arith.constant dense<0.000000e+00> : vector<16xf32>
    %109 = vector.multi_reduction <add>, %108, %cst_37 [1] : vector<16x32xf32> to vector<16xf32>
    %110 = vector.shape_cast %109 : vector<16xf32> to vector<16x1xf32>
    %cst_38 = arith.constant 3.200000e+01 : f32
    %111 = vector.broadcast %cst_38 : f32 to vector<16x1xf32>
    %112 = arith.divf %110, %111 : vector<16x1xf32>
    %113 = vector.broadcast %105 : vector<16x1xf32> to vector<16x32xf32>
    %114 = arith.subf %97, %113 : vector<16x32xf32>
    %cst_39 = arith.constant 9.99999996E-13 : f32
    %115 = vector.broadcast %cst_39 : f32 to vector<16x1xf32>
    %116 = arith.addf %112, %115 : vector<16x1xf32>
    %117 = math.rsqrt %116 : vector<16x1xf32>
    %118 = vector.broadcast %117 : vector<16x1xf32> to vector<16x32xf32>
    %119 = arith.mulf %114, %118 : vector<16x32xf32>
    %120 = vector.broadcast %99 : vector<1x32xf32> to vector<16x32xf32>
    %121 = arith.mulf %119, %120 : vector<16x32xf32>
    %122 = vector.broadcast %101 : vector<1x32xf32> to vector<16x32xf32>
    %123 = arith.addf %121, %122 : vector<16x32xf32>
    %c0_40 = arith.constant 0 : index
    %c0_41 = arith.constant 0 : index
    %c0_42 = arith.constant 0 : index
    %124 = vector.load %arg10[%c0_40, %c0_41, %c0_42] : memref<2x32x64xbf16, #tpu.memory_space<vmem>>, vector<1x32x64xbf16>
    %125 = vector.shape_cast %124 : vector<1x32x64xbf16> to vector<32x64xbf16>
    %126 = arith.truncf %123 : vector<16x32xf32> to vector<16x32xbf16>
    %cst_43 = arith.constant dense<0.000000e+00> : vector<16x64xf32>
    %127 = tpu.matmul %126, %125, %cst_43 {dimension_numbers = #tpu.dot_dimension_numbers<[1], [0], [0], [1], [0, 0, 1, 1], [], []>} : vector<16x32xbf16>, vector<32x64xbf16>, vector<16x64xf32> -> vector<16x64xf32>
    %c0_44 = arith.constant 0 : index
    %c0_45 = arith.constant 0 : index
    %c0_46 = arith.constant 0 : index
    %128 = vector.load %arg11[%c0_44, %c0_45, %c0_46] : memref<2x1x64xf32, #tpu.memory_space<vmem>>, vector<1x1x64xf32>
    %129 = vector.shape_cast %128 : vector<1x1x64xf32> to vector<1x64xf32>
    %130 = vector.broadcast %129 : vector<1x64xf32> to vector<16x64xf32>
    %131 = arith.addf %127, %130 : vector<16x64xf32>
    %132 = arith.mulf %131, %131 : vector<16x64xf32>
    %133 = arith.mulf %131, %132 : vector<16x64xf32>
    %cst_47 = arith.constant 4.471500e-02 : f32
    %134 = vector.broadcast %cst_47 : f32 to vector<16x64xf32>
    %135 = arith.mulf %134, %133 : vector<16x64xf32>
    %136 = arith.addf %131, %135 : vector<16x64xf32>
    %cst_48 = arith.constant 0.797884583 : f32
    %137 = vector.broadcast %cst_48 : f32 to vector<16x64xf32>
    %138 = arith.mulf %137, %136 : vector<16x64xf32>
    %139 = math.tanh %138 : vector<16x64xf32>
    %cst_49 = arith.constant 1.000000e+00 : f32
    %140 = vector.broadcast %cst_49 : f32 to vector<16x64xf32>
    %141 = arith.addf %140, %139 : vector<16x64xf32>
    %cst_50 = arith.constant 5.000000e-01 : f32
    %142 = vector.broadcast %cst_50 : f32 to vector<16x64xf32>
    %143 = arith.mulf %142, %141 : vector<16x64xf32>
    %144 = arith.mulf %131, %143 : vector<16x64xf32>
    %c0_51 = arith.constant 0 : index
    %c0_52 = arith.constant 0 : index
    %c0_53 = arith.constant 0 : index
    %145 = vector.load %arg12[%c0_51, %c0_52, %c0_53] : memref<2x64x32xbf16, #tpu.memory_space<vmem>>, vector<1x64x32xbf16>
    %146 = vector.shape_cast %145 : vector<1x64x32xbf16> to vector<64x32xbf16>
    %147 = arith.truncf %144 : vector<16x64xf32> to vector<16x64xbf16>
    %cst_54 = arith.constant dense<0.000000e+00> : vector<16x32xf32>
    %148 = tpu.matmul %147, %146, %cst_54 {dimension_numbers = #tpu.dot_dimension_numbers<[1], [0], [0], [1], [0, 0, 1, 1], [], []>} : vector<16x64xbf16>, vector<64x32xbf16>, vector<16x32xf32> -> vector<16x32xf32>
    %c0_55 = arith.constant 0 : index
    %c0_56 = arith.constant 0 : index
    %c0_57 = arith.constant 0 : index
    %149 = vector.load %arg13[%c0_55, %c0_56, %c0_57] : memref<2x1x32xf32, #tpu.memory_space<vmem>>, vector<1x1x32xf32>
    %150 = vector.shape_cast %149 : vector<1x1x32xf32> to vector<1x32xf32>
    %151 = vector.broadcast %150 : vector<1x32xf32> to vector<16x32xf32>
    %152 = arith.addf %148, %151 : vector<16x32xf32>
    %153 = arith.addf %152, %123 : vector<16x32xf32>
    %c0_58 = arith.constant 0 : index
    %c0_59 = arith.constant 0 : index
    %c0_60 = arith.constant 0 : index
    %154 = vector.load %arg14[%c0_58, %c0_59, %c0_60] : memref<2x1x32xf32, #tpu.memory_space<vmem>>, vector<1x1x32xf32>
    %155 = vector.shape_cast %154 : vector<1x1x32xf32> to vector<1x32xf32>
    %c0_61 = arith.constant 0 : index
    %c0_62 = arith.constant 0 : index
    %c0_63 = arith.constant 0 : index
    %156 = vector.load %arg15[%c0_61, %c0_62, %c0_63] : memref<2x1x32xf32, #tpu.memory_space<vmem>>, vector<1x1x32xf32>
    %157 = vector.shape_cast %156 : vector<1x1x32xf32> to vector<1x32xf32>
    %cst_64 = arith.constant dense<0.000000e+00> : vector<16xf32>
    %158 = vector.multi_reduction <add>, %153, %cst_64 [1] : vector<16x32xf32> to vector<16xf32>
    %159 = vector.shape_cast %158 : vector<16xf32> to vector<16x1xf32>
    %cst_65 = arith.constant 3.200000e+01 : f32
    %160 = vector.broadcast %cst_65 : f32 to vector<16x1xf32>
    %161 = arith.divf %159, %160 : vector<16x1xf32>
    %162 = vector.broadcast %161 : vector<16x1xf32> to vector<16x32xf32>
    %163 = arith.subf %153, %162 : vector<16x32xf32>
    %164 = arith.mulf %163, %163 : vector<16x32xf32>
    %cst_66 = arith.constant dense<0.000000e+00> : vector<16xf32>
    %165 = vector.multi_reduction <add>, %164, %cst_66 [1] : vector<16x32xf32> to vector<16xf32>
    %166 = vector.shape_cast %165 : vector<16xf32> to vector<16x1xf32>
    %cst_67 = arith.constant 3.200000e+01 : f32
    %167 = vector.broadcast %cst_67 : f32 to vector<16x1xf32>
    %168 = arith.divf %166, %167 : vector<16x1xf32>
    %169 = vector.broadcast %161 : vector<16x1xf32> to vector<16x32xf32>
    %170 = arith.subf %153, %169 : vector<16x32xf32>
    %cst_68 = arith.constant 9.99999996E-13 : f32
    %171 = vector.broadcast %cst_68 : f32 to vector<16x1xf32>
    %172 = arith.addf %168, %171 : vector<16x1xf32>
    %173 = math.rsqrt %172 : vector<16x1xf32>
    %174 = vector.broadcast %173 : vector<16x1xf32> to vector<16x32xf32>
    %175 = arith.mulf %170, %174 : vector<16x32xf32>
    %176 = vector.broadcast %155 : vector<1x32xf32> to vector<16x32xf32>
    %177 = arith.mulf %175, %176 : vector<16x32xf32>
    %178 = vector.broadcast %157 : vector<1x32xf32> to vector<16x32xf32>
    %179 = arith.addf %177, %178 : vector<16x32xf32>
    %c1 = arith.constant 1 : index
    %c0_69 = arith.constant 0 : index
    %c0_70 = arith.constant 0 : index
    %180 = vector.load %arg4[%c1, %c0_69, %c0_70] : memref<2x32x96xbf16, #tpu.memory_space<vmem>>, vector<1x32x96xbf16>
    %181 = vector.shape_cast %180 : vector<1x32x96xbf16> to vector<32x96xbf16>
    %182 = arith.truncf %179 : vector<16x32xf32> to vector<16x32xbf16>
    %cst_71 = arith.constant dense<0.000000e+00> : vector<16x96xf32>
    %183 = tpu.matmul %182, %181, %cst_71 {dimension_numbers = #tpu.dot_dimension_numbers<[1], [0], [0], [1], [0, 0, 1, 1], [], []>} : vector<16x32xbf16>, vector<32x96xbf16>, vector<16x96xf32> -> vector<16x96xf32>
    %c1_72 = arith.constant 1 : index
    %c0_73 = arith.constant 0 : index
    %c0_74 = arith.constant 0 : index
    %184 = vector.load %arg5[%c1_72, %c0_73, %c0_74] : memref<2x1x96xf32, #tpu.memory_space<vmem>>, vector<1x1x96xf32>
    %185 = vector.shape_cast %184 : vector<1x1x96xf32> to vector<1x96xf32>
    %186 = vector.broadcast %185 : vector<1x96xf32> to vector<16x96xf32>
    %187 = arith.addf %183, %186 : vector<16x96xf32>
    %188 = arith.truncf %187 : vector<16x96xf32> to vector<16x96xbf16>
    %189 = vector.extract_strided_slice %188 {offsets = [0, 0], sizes = [16, 32], strides = [1, 1]} : vector<16x96xbf16> to vector<16x32xbf16>
    %190 = vector.extract_strided_slice %189 {offsets = [0, 0], sizes = [8, 8], strides = [1, 1]} : vector<16x32xbf16> to vector<8x8xbf16>
    %191 = vector.extract_strided_slice %189 {offsets = [0, 8], sizes = [8, 8], strides = [1, 1]} : vector<16x32xbf16> to vector<8x8xbf16>
    %192 = vector.extract_strided_slice %189 {offsets = [0, 16], sizes = [8, 8], strides = [1, 1]} : vector<16x32xbf16> to vector<8x8xbf16>
    %193 = vector.extract_strided_slice %189 {offsets = [0, 24], sizes = [8, 8], strides = [1, 1]} : vector<16x32xbf16> to vector<8x8xbf16>
    %194 = vector.extract_strided_slice %189 {offsets = [8, 0], sizes = [8, 8], strides = [1, 1]} : vector<16x32xbf16> to vector<8x8xbf16>
    %195 = vector.extract_strided_slice %189 {offsets = [8, 8], sizes = [8, 8], strides = [1, 1]} : vector<16x32xbf16> to vector<8x8xbf16>
    %196 = vector.extract_strided_slice %189 {offsets = [8, 16], sizes = [8, 8], strides = [1, 1]} : vector<16x32xbf16> to vector<8x8xbf16>
    %197 = vector.extract_strided_slice %189 {offsets = [8, 24], sizes = [8, 8], strides = [1, 1]} : vector<16x32xbf16> to vector<8x8xbf16>
    %198 = tpu.concatenate %190, %191, %192, %193, %194, %195, %196, %197 in 0 : vector<8x8xbf16>, vector<8x8xbf16>, vector<8x8xbf16>, vector<8x8xbf16>, vector<8x8xbf16>, vector<8x8xbf16>, vector<8x8xbf16>, vector<8x8xbf16> -> vector<64x8xbf16>
    %199 = vector.extract_strided_slice %188 {offsets = [0, 32], sizes = [16, 32], strides = [1, 1]} : vector<16x96xbf16> to vector<16x32xbf16>
    %200 = vector.extract_strided_slice %199 {offsets = [0, 0], sizes = [8, 8], strides = [1, 1]} : vector<16x32xbf16> to vector<8x8xbf16>
    %201 = vector.extract_strided_slice %199 {offsets = [0, 8], sizes = [8, 8], strides = [1, 1]} : vector<16x32xbf16> to vector<8x8xbf16>
    %202 = vector.extract_strided_slice %199 {offsets = [0, 16], sizes = [8, 8], strides = [1, 1]} : vector<16x32xbf16> to vector<8x8xbf16>
    %203 = vector.extract_strided_slice %199 {offsets = [0, 24], sizes = [8, 8], strides = [1, 1]} : vector<16x32xbf16> to vector<8x8xbf16>
    %204 = vector.extract_strided_slice %199 {offsets = [8, 0], sizes = [8, 8], strides = [1, 1]} : vector<16x32xbf16> to vector<8x8xbf16>
    %205 = vector.extract_strided_slice %199 {offsets = [8, 8], sizes = [8, 8], strides = [1, 1]} : vector<16x32xbf16> to vector<8x8xbf16>
    %206 = vector.extract_strided_slice %199 {offsets = [8, 16], sizes = [8, 8], strides = [1, 1]} : vector<16x32xbf16> to vector<8x8xbf16>
    %207 = vector.extract_strided_slice %199 {offsets = [8, 24], sizes = [8, 8], strides = [1, 1]} : vector<16x32xbf16> to vector<8x8xbf16>
    %208 = tpu.concatenate %200, %201, %202, %203, %204, %205, %206, %207 in 0 : vector<8x8xbf16>, vector<8x8xbf16>, vector<8x8xbf16>, vector<8x8xbf16>, vector<8x8xbf16>, vector<8x8xbf16>, vector<8x8xbf16>, vector<8x8xbf16> -> vector<64x8xbf16>
    %209 = vector.extract_strided_slice %188 {offsets = [0, 64], sizes = [16, 32], strides = [1, 1]} : vector<16x96xbf16> to vector<16x32xbf16>
    %210 = vector.extract_strided_slice %209 {offsets = [0, 0], sizes = [8, 8], strides = [1, 1]} : vector<16x32xbf16> to vector<8x8xbf16>
    %211 = vector.extract_strided_slice %209 {offsets = [0, 8], sizes = [8, 8], strides = [1, 1]} : vector<16x32xbf16> to vector<8x8xbf16>
    %212 = vector.extract_strided_slice %209 {offsets = [0, 16], sizes = [8, 8], strides = [1, 1]} : vector<16x32xbf16> to vector<8x8xbf16>
    %213 = vector.extract_strided_slice %209 {offsets = [0, 24], sizes = [8, 8], strides = [1, 1]} : vector<16x32xbf16> to vector<8x8xbf16>
    %214 = vector.extract_strided_slice %209 {offsets = [8, 0], sizes = [8, 8], strides = [1, 1]} : vector<16x32xbf16> to vector<8x8xbf16>
    %215 = vector.extract_strided_slice %209 {offsets = [8, 8], sizes = [8, 8], strides = [1, 1]} : vector<16x32xbf16> to vector<8x8xbf16>
    %216 = vector.extract_strided_slice %209 {offsets = [8, 16], sizes = [8, 8], strides = [1, 1]} : vector<16x32xbf16> to vector<8x8xbf16>
    %217 = vector.extract_strided_slice %209 {offsets = [8, 24], sizes = [8, 8], strides = [1, 1]} : vector<16x32xbf16> to vector<8x8xbf16>
    %218 = tpu.concatenate %210, %211, %212, %213, %214, %215, %216, %217 in 0 : vector<8x8xbf16>, vector<8x8xbf16>, vector<8x8xbf16>, vector<8x8xbf16>, vector<8x8xbf16>, vector<8x8xbf16>, vector<8x8xbf16>, vector<8x8xbf16> -> vector<64x8xbf16>
    %cst_75 = arith.constant dense<0.000000e+00> : vector<64x64xf32>
    %219 = tpu.matmul %198, %208, %cst_75 {dimension_numbers = #tpu.dot_dimension_numbers<[1], [1], [0], [0], [0, 0, 1, 0], [], []>} : vector<64x8xbf16>, vector<64x8xbf16>, vector<64x64xf32> -> vector<64x64xf32>
    %220 = arith.addf %219, %25 : vector<64x64xf32>
    %cst_76 = arith.constant dense<0xFF800000> : vector<64xf32>
    %221 = vector.multi_reduction <maximumf>, %220, %cst_76 [1] : vector<64x64xf32> to vector<64xf32>
    %222 = vector.shape_cast %221 : vector<64xf32> to vector<64x1xf32>
    %223 = vector.broadcast %222 : vector<64x1xf32> to vector<64x64xf32>
    %224 = arith.subf %220, %223 : vector<64x64xf32>
    %225 = math.exp %224 : vector<64x64xf32>
    %cst_77 = arith.constant dense<0.000000e+00> : vector<64xf32>
    %226 = vector.multi_reduction <add>, %225, %cst_77 [1] : vector<64x64xf32> to vector<64xf32>
    %227 = vector.shape_cast %226 : vector<64xf32> to vector<64x1xf32>
    %228 = vector.broadcast %227 : vector<64x1xf32> to vector<64x64xf32>
    %229 = arith.divf %225, %228 : vector<64x64xf32>
    %230 = arith.truncf %229 : vector<64x64xf32> to vector<64x64xbf16>
    %cst_78 = arith.constant dense<0.000000e+00> : vector<64x8xf32>
    %231 = tpu.matmul %230, %218, %cst_78 {dimension_numbers = #tpu.dot_dimension_numbers<[1], [0], [0], [1], [0, 0, 1, 1], [], []>} : vector<64x64xbf16>, vector<64x8xbf16>, vector<64x8xf32> -> vector<64x8xf32>
    %232 = vector.extract_strided_slice %231 {offsets = [0, 0], sizes = [8, 8], strides = [1, 1]} : vector<64x8xf32> to vector<8x8xf32>
    %233 = vector.extract_strided_slice %231 {offsets = [8, 0], sizes = [8, 8], strides = [1, 1]} : vector<64x8xf32> to vector<8x8xf32>
    %234 = vector.extract_strided_slice %231 {offsets = [16, 0], sizes = [8, 8], strides = [1, 1]} : vector<64x8xf32> to vector<8x8xf32>
    %235 = vector.extract_strided_slice %231 {offsets = [24, 0], sizes = [8, 8], strides = [1, 1]} : vector<64x8xf32> to vector<8x8xf32>
    %236 = tpu.concatenate %232, %233, %234, %235 in 1 : vector<8x8xf32>, vector<8x8xf32>, vector<8x8xf32>, vector<8x8xf32> -> vector<8x32xf32>
    %237 = vector.extract_strided_slice %231 {offsets = [32, 0], sizes = [8, 8], strides = [1, 1]} : vector<64x8xf32> to vector<8x8xf32>
    %238 = vector.extract_strided_slice %231 {offsets = [40, 0], sizes = [8, 8], strides = [1, 1]} : vector<64x8xf32> to vector<8x8xf32>
    %239 = vector.extract_strided_slice %231 {offsets = [48, 0], sizes = [8, 8], strides = [1, 1]} : vector<64x8xf32> to vector<8x8xf32>
    %240 = vector.extract_strided_slice %231 {offsets = [56, 0], sizes = [8, 8], strides = [1, 1]} : vector<64x8xf32> to vector<8x8xf32>
    %241 = tpu.concatenate %237, %238, %239, %240 in 1 : vector<8x8xf32>, vector<8x8xf32>, vector<8x8xf32>, vector<8x8xf32> -> vector<8x32xf32>
    %242 = tpu.concatenate %236, %241 in 0 : vector<8x32xf32>, vector<8x32xf32> -> vector<16x32xf32>
    %c1_79 = arith.constant 1 : index
    %c0_80 = arith.constant 0 : index
    %c0_81 = arith.constant 0 : index
    %243 = vector.load %arg6[%c1_79, %c0_80, %c0_81] : memref<2x32x32xbf16, #tpu.memory_space<vmem>>, vector<1x32x32xbf16>
    %244 = vector.shape_cast %243 : vector<1x32x32xbf16> to vector<32x32xbf16>
    %245 = arith.truncf %242 : vector<16x32xf32> to vector<16x32xbf16>
    %cst_82 = arith.constant dense<0.000000e+00> : vector<16x32xf32>
    %246 = tpu.matmul %245, %244, %cst_82 {dimension_numbers = #tpu.dot_dimension_numbers<[1], [0], [0], [1], [0, 0, 1, 1], [], []>} : vector<16x32xbf16>, vector<32x32xbf16>, vector<16x32xf32> -> vector<16x32xf32>
    %c1_83 = arith.constant 1 : index
    %c0_84 = arith.constant 0 : index
    %c0_85 = arith.constant 0 : index
    %247 = vector.load %arg7[%c1_83, %c0_84, %c0_85] : memref<2x1x32xf32, #tpu.memory_space<vmem>>, vector<1x1x32xf32>
    %248 = vector.shape_cast %247 : vector<1x1x32xf32> to vector<1x32xf32>
    %249 = vector.broadcast %248 : vector<1x32xf32> to vector<16x32xf32>
    %250 = arith.addf %246, %249 : vector<16x32xf32>
    %251 = arith.addf %250, %179 : vector<16x32xf32>
    %c1_86 = arith.constant 1 : index
    %c0_87 = arith.constant 0 : index
    %c0_88 = arith.constant 0 : index
    %252 = vector.load %arg8[%c1_86, %c0_87, %c0_88] : memref<2x1x32xf32, #tpu.memory_space<vmem>>, vector<1x1x32xf32>
    %253 = vector.shape_cast %252 : vector<1x1x32xf32> to vector<1x32xf32>
    %c1_89 = arith.constant 1 : index
    %c0_90 = arith.constant 0 : index
    %c0_91 = arith.constant 0 : index
    %254 = vector.load %arg9[%c1_89, %c0_90, %c0_91] : memref<2x1x32xf32, #tpu.memory_space<vmem>>, vector<1x1x32xf32>
    %255 = vector.shape_cast %254 : vector<1x1x32xf32> to vector<1x32xf32>
    %cst_92 = arith.constant dense<0.000000e+00> : vector<16xf32>
    %256 = vector.multi_reduction <add>, %251, %cst_92 [1] : vector<16x32xf32> to vector<16xf32>
    %257 = vector.shape_cast %256 : vector<16xf32> to vector<16x1xf32>
    %cst_93 = arith.constant 3.200000e+01 : f32
    %258 = vector.broadcast %cst_93 : f32 to vector<16x1xf32>
    %259 = arith.divf %257, %258 : vector<16x1xf32>
    %260 = vector.broadcast %259 : vector<16x1xf32> to vector<16x32xf32>
    %261 = arith.subf %251, %260 : vector<16x32xf32>
    %262 = arith.mulf %261, %261 : vector<16x32xf32>
    %cst_94 = arith.constant dense<0.000000e+00> : vector<16xf32>
    %263 = vector.multi_reduction <add>, %262, %cst_94 [1] : vector<16x32xf32> to vector<16xf32>
    %264 = vector.shape_cast %263 : vector<16xf32> to vector<16x1xf32>
    %cst_95 = arith.constant 3.200000e+01 : f32
    %265 = vector.broadcast %cst_95 : f32 to vector<16x1xf32>
    %266 = arith.divf %264, %265 : vector<16x1xf32>
    %267 = vector.broadcast %259 : vector<16x1xf32> to vector<16x32xf32>
    %268 = arith.subf %251, %267 : vector<16x32xf32>
    %cst_96 = arith.constant 9.99999996E-13 : f32
    %269 = vector.broadcast %cst_96 : f32 to vector<16x1xf32>
    %270 = arith.addf %266, %269 : vector<16x1xf32>
    %271 = math.rsqrt %270 : vector<16x1xf32>
    %272 = vector.broadcast %271 : vector<16x1xf32> to vector<16x32xf32>
    %273 = arith.mulf %268, %272 : vector<16x32xf32>
    %274 = vector.broadcast %253 : vector<1x32xf32> to vector<16x32xf32>
    %275 = arith.mulf %273, %274 : vector<16x32xf32>
    %276 = vector.broadcast %255 : vector<1x32xf32> to vector<16x32xf32>
    %277 = arith.addf %275, %276 : vector<16x32xf32>
    %c1_97 = arith.constant 1 : index
    %c0_98 = arith.constant 0 : index
    %c0_99 = arith.constant 0 : index
    %278 = vector.load %arg10[%c1_97, %c0_98, %c0_99] : memref<2x32x64xbf16, #tpu.memory_space<vmem>>, vector<1x32x64xbf16>
    %279 = vector.shape_cast %278 : vector<1x32x64xbf16> to vector<32x64xbf16>
    %280 = arith.truncf %277 : vector<16x32xf32> to vector<16x32xbf16>
    %cst_100 = arith.constant dense<0.000000e+00> : vector<16x64xf32>
    %281 = tpu.matmul %280, %279, %cst_100 {dimension_numbers = #tpu.dot_dimension_numbers<[1], [0], [0], [1], [0, 0, 1, 1], [], []>} : vector<16x32xbf16>, vector<32x64xbf16>, vector<16x64xf32> -> vector<16x64xf32>
    %c1_101 = arith.constant 1 : index
    %c0_102 = arith.constant 0 : index
    %c0_103 = arith.constant 0 : index
    %282 = vector.load %arg11[%c1_101, %c0_102, %c0_103] : memref<2x1x64xf32, #tpu.memory_space<vmem>>, vector<1x1x64xf32>
    %283 = vector.shape_cast %282 : vector<1x1x64xf32> to vector<1x64xf32>
    %284 = vector.broadcast %283 : vector<1x64xf32> to vector<16x64xf32>
    %285 = arith.addf %281, %284 : vector<16x64xf32>
    %286 = arith.mulf %285, %285 : vector<16x64xf32>
    %287 = arith.mulf %285, %286 : vector<16x64xf32>
    %cst_104 = arith.constant 4.471500e-02 : f32
    %288 = vector.broadcast %cst_104 : f32 to vector<16x64xf32>
    %289 = arith.mulf %288, %287 : vector<16x64xf32>
    %290 = arith.addf %285, %289 : vector<16x64xf32>
    %cst_105 = arith.constant 0.797884583 : f32
    %291 = vector.broadcast %cst_105 : f32 to vector<16x64xf32>
    %292 = arith.mulf %291, %290 : vector<16x64xf32>
    %293 = math.tanh %292 : vector<16x64xf32>
    %cst_106 = arith.constant 1.000000e+00 : f32
    %294 = vector.broadcast %cst_106 : f32 to vector<16x64xf32>
    %295 = arith.addf %294, %293 : vector<16x64xf32>
    %cst_107 = arith.constant 5.000000e-01 : f32
    %296 = vector.broadcast %cst_107 : f32 to vector<16x64xf32>
    %297 = arith.mulf %296, %295 : vector<16x64xf32>
    %298 = arith.mulf %285, %297 : vector<16x64xf32>
    %c1_108 = arith.constant 1 : index
    %c0_109 = arith.constant 0 : index
    %c0_110 = arith.constant 0 : index
    %299 = vector.load %arg12[%c1_108, %c0_109, %c0_110] : memref<2x64x32xbf16, #tpu.memory_space<vmem>>, vector<1x64x32xbf16>
    %300 = vector.shape_cast %299 : vector<1x64x32xbf16> to vector<64x32xbf16>
    %301 = arith.truncf %298 : vector<16x64xf32> to vector<16x64xbf16>
    %cst_111 = arith.constant dense<0.000000e+00> : vector<16x32xf32>
    %302 = tpu.matmul %301, %300, %cst_111 {dimension_numbers = #tpu.dot_dimension_numbers<[1], [0], [0], [1], [0, 0, 1, 1], [], []>} : vector<16x64xbf16>, vector<64x32xbf16>, vector<16x32xf32> -> vector<16x32xf32>
    %c1_112 = arith.constant 1 : index
    %c0_113 = arith.constant 0 : index
    %c0_114 = arith.constant 0 : index
    %303 = vector.load %arg13[%c1_112, %c0_113, %c0_114] : memref<2x1x32xf32, #tpu.memory_space<vmem>>, vector<1x1x32xf32>
    %304 = vector.shape_cast %303 : vector<1x1x32xf32> to vector<1x32xf32>
    %305 = vector.broadcast %304 : vector<1x32xf32> to vector<16x32xf32>
    %306 = arith.addf %302, %305 : vector<16x32xf32>
    %307 = arith.addf %306, %277 : vector<16x32xf32>
    %c1_115 = arith.constant 1 : index
    %c0_116 = arith.constant 0 : index
    %c0_117 = arith.constant 0 : index
    %308 = vector.load %arg14[%c1_115, %c0_116, %c0_117] : memref<2x1x32xf32, #tpu.memory_space<vmem>>, vector<1x1x32xf32>
    %309 = vector.shape_cast %308 : vector<1x1x32xf32> to vector<1x32xf32>
    %c1_118 = arith.constant 1 : index
    %c0_119 = arith.constant 0 : index
    %c0_120 = arith.constant 0 : index
    %310 = vector.load %arg15[%c1_118, %c0_119, %c0_120] : memref<2x1x32xf32, #tpu.memory_space<vmem>>, vector<1x1x32xf32>
    %311 = vector.shape_cast %310 : vector<1x1x32xf32> to vector<1x32xf32>
    %cst_121 = arith.constant dense<0.000000e+00> : vector<16xf32>
    %312 = vector.multi_reduction <add>, %307, %cst_121 [1] : vector<16x32xf32> to vector<16xf32>
    %313 = vector.shape_cast %312 : vector<16xf32> to vector<16x1xf32>
    %cst_122 = arith.constant 3.200000e+01 : f32
    %314 = vector.broadcast %cst_122 : f32 to vector<16x1xf32>
    %315 = arith.divf %313, %314 : vector<16x1xf32>
    %316 = vector.broadcast %315 : vector<16x1xf32> to vector<16x32xf32>
    %317 = arith.subf %307, %316 : vector<16x32xf32>
    %318 = arith.mulf %317, %317 : vector<16x32xf32>
    %cst_123 = arith.constant dense<0.000000e+00> : vector<16xf32>
    %319 = vector.multi_reduction <add>, %318, %cst_123 [1] : vector<16x32xf32> to vector<16xf32>
    %320 = vector.shape_cast %319 : vector<16xf32> to vector<16x1xf32>
    %cst_124 = arith.constant 3.200000e+01 : f32
    %321 = vector.broadcast %cst_124 : f32 to vector<16x1xf32>
    %322 = arith.divf %320, %321 : vector<16x1xf32>
    %323 = vector.broadcast %315 : vector<16x1xf32> to vector<16x32xf32>
    %324 = arith.subf %307, %323 : vector<16x32xf32>
    %cst_125 = arith.constant 9.99999996E-13 : f32
    %325 = vector.broadcast %cst_125 : f32 to vector<16x1xf32>
    %326 = arith.addf %322, %325 : vector<16x1xf32>
    %327 = math.rsqrt %326 : vector<16x1xf32>
    %328 = vector.broadcast %327 : vector<16x1xf32> to vector<16x32xf32>
    %329 = arith.mulf %324, %328 : vector<16x32xf32>
    %330 = vector.broadcast %309 : vector<1x32xf32> to vector<16x32xf32>
    %331 = arith.mulf %329, %330 : vector<16x32xf32>
    %332 = vector.broadcast %311 : vector<1x32xf32> to vector<16x32xf32>
    %333 = arith.addf %331, %332 : vector<16x32xf32>
    %334 = vector.extract_strided_slice %333 {offsets = [0, 0], sizes = [1, 32], strides = [1, 1]} : vector<16x32xf32> to vector<1x32xf32>
    %335 = vector.extract_strided_slice %333 {offsets = [8, 0], sizes = [1, 32], strides = [1, 1]} : vector<16x32xf32> to vector<1x32xf32>
    %336 = tpu.concatenate %334, %335 in 0 : vector<1x32xf32>, vector<1x32xf32> -> vector<2x32xf32>
    %c0_126 = arith.constant 0 : index
    %c0_127 = arith.constant 0 : index
    %337 = vector.load %arg16[%c0_126, %c0_127] : memref<32x32xbf16, #tpu.memory_space<vmem>>, vector<32x32xbf16>
    %338 = arith.truncf %336 : vector<2x32xf32> to vector<2x32xbf16>
    %cst_128 = arith.constant dense<0.000000e+00> : vector<2x32xf32>
    %339 = tpu.matmul %338, %337, %cst_128 {dimension_numbers = #tpu.dot_dimension_numbers<[1], [0], [0], [1], [0, 0, 1, 1], [], []>} : vector<2x32xbf16>, vector<32x32xbf16>, vector<2x32xf32> -> vector<2x32xf32>
    %c0_129 = arith.constant 0 : index
    %c0_130 = arith.constant 0 : index
    %340 = vector.load %arg17[%c0_129, %c0_130] : memref<1x32xf32, #tpu.memory_space<vmem>>, vector<1x32xf32>
    %341 = vector.broadcast %340 : vector<1x32xf32> to vector<2x32xf32>
    %342 = arith.addf %339, %341 : vector<2x32xf32>
    %343 = math.tanh %342 : vector<2x32xf32>
    %c0_131 = arith.constant 0 : index
    %c0_132 = arith.constant 0 : index
    %344 = vector.load %arg18[%c0_131, %c0_132] : memref<32x128xbf16, #tpu.memory_space<vmem>>, vector<32x128xbf16>
    %345 = arith.truncf %343 : vector<2x32xf32> to vector<2x32xbf16>
    %cst_133 = arith.constant dense<0.000000e+00> : vector<2x128xf32>
    %346 = tpu.matmul %345, %344, %cst_133 {dimension_numbers = #tpu.dot_dimension_numbers<[1], [0], [0], [1], [0, 0, 1, 1], [], []>} : vector<2x32xbf16>, vector<32x128xbf16>, vector<2x128xf32> -> vector<2x128xf32>
    %c0_134 = arith.constant 0 : index
    %c0_135 = arith.constant 0 : index
    %347 = vector.load %arg19[%c0_134, %c0_135] : memref<1x128xf32, #tpu.memory_space<vmem>>, vector<1x128xf32>
    %348 = vector.broadcast %347 : vector<1x128xf32> to vector<2x128xf32>
    %349 = arith.addf %346, %348 : vector<2x128xf32>
    %c0_136 = arith.constant 0 : index
    %c0_137 = arith.constant 0 : index
    %350 = vector.load %arg20[%c0_136, %c0_137] : memref<2x128xf32, #tpu.memory_space<vmem>>, vector<2x128xf32>
    tpu.vector_store %arg20[%c0_136, %c0_137], %349 {strides = array<i32>} : memref<2x128xf32, #tpu.memory_space<vmem>>, vector<2x128xf32>,
    return
  }
}

</mosaic_0001>

<bundles_post_ra>
// kernel: tpu_custom_call.1
= control target key start
LH: loop header
LB: loop body
LE: loop exit
PB: predicated region body
PF: predicated region fallthrough
CT: control target
= control target key end

     0   :  { %s3341_s0 = inlined_call_operand.hbm [shape: f32[16,32], index: 0, kind: input, shape index: {}]   ;;  %s3342_s1 = inlined_call_operand.vmem [shape: f32[64,64], index: 1, kind: input, shape index: {}]   ;;  %s3343_s2 = inlined_call_operand.hbm [shape: f32[1,32], index: 2, kind: input, shape index: {}]   ;;  %s3344_s3 = inlined_call_operand.hbm [shape: f32[1,32], index: 3, kind: input, shape index: {}]   ;;  %s3345_s4 = inlined_call_operand.vmem [shape: bf16[2,32,96], index: 4, kind: input, shape index: {}]   ;;  %s3346_s5 = inlined_call_operand.hbm [shape: f32[2,1,96], index: 5, kind: input, shape index: {}]   ;;  %s3347_s6 = inlined_call_operand.hbm [shape: bf16[2,32,32], index: 6, kind: input, shape index: {}]   ;;  %s3348_s7 = inlined_call_operand.hbm [shape: f32[2,1,32], index: 7, kind: input, shape index: {}]   ;;  %s3349_s8 = inlined_call_operand.hbm [shape: f32[2,1,32], index: 8, kind: input, shape index: {}]   ;;  %s3350_s9 = inlined_call_operand.hbm [shape: f32[2,1,32], index: 9, kind: input, shape index: {}]   ;;  %s3351_s10 = inlined_call_operand.hbm [shape: bf16[2,32,64], index: 10, kind: input, shape index: {}]   ;;  %s3352_s11 = inlined_call_operand.hbm [shape: f32[2,1,64], index: 11, kind: input, shape index: {}]   ;;  %s3353_s12 = inlined_call_operand.vmem [shape: bf16[2,64,32], index: 12, kind: input, shape index: {}]   ;;  %s3354_s13 = inlined_call_operand.hbm [shape: f32[2,1,32], index: 13, kind: input, shape index: {}]   ;;  %s3355_s14 = inlined_call_operand.hbm [shape: f32[2,1,32], index: 14, kind: input, shape index: {}]   ;;  %s3356_s15 = inlined_call_operand.hbm [shape: f32[2,1,32], index: 15, kind: input, shape index: {}]   ;;  %s3357_s16 = inlined_call_operand.vmem [shape: bf16[32,32], index: 16, kind: input, shape index: {}]   ;;  %s3358_s17 = inlined_call_operand.hbm [shape: f32[1,32], index: 17, kind: input, shape index: {}]   ;;  %s3359_s18 = inlined_call_operand.vmem [shape: bf16[32,128], index: 18, kind: input, shape index: {}]   ;;  %s3360_s19 = inlined_call_operand.vmem [shape: f32[1,128], index: 19, kind: input, shape index: {}]   ;;  %s3361_s20 = inlined_call_operand.hbm [shape: f32[2,128], index: 20, kind: output, shape index: {}]  }
   0x1   :  { %3364 = sst [smem:[#allocation35_spill]] %s3341_s0 }
   0x2   :  { %3365 = sst [smem:[#allocation36_spill]] %s3342_s1 }
   0x3   :  { %3366 = sst [smem:[#allocation37_spill]] %s3343_s2 }
   0x4   :  { %3367 = sst [smem:[#allocation38_spill]] %s3344_s3 }
   0x5   :  { %3368 = sst [smem:[#allocation39_spill]] %s3345_s4 }
   0x6   :  { %25 = vsyncpa [#allocation3], 0 }
   0x7   :  { %26 = vsyncpa [#allocation6], 0 }
   0x8   :  { %27 = vsyncpa [#allocation9], 0 }
   0x9   :  { %28 = vsyncpa [#allocation12], 0 }
   0xa   :  { %29 = vsyncpa [#allocation15], 0 }
   0xb   :  { %30 = vsyncpa [#allocation18], 0 }
   0xc   :  { %31 = vsyncpa [#allocation21], 0 }
   0xd   :  { %32 = vsyncpa [#allocation24], 0 }
   0xe   :  { %33 = vsyncpa [#allocation4], 0  ;;  %s2755_s1 = smov [#allocation5]   ;;  %s2756_s23 = smov [#allocation8]  }
   0xf   :  { %s54_s22 = sshll.u32 %s2755_s1, 4  ;;  %s75_s24 = sshll.u32 %s2756_s23, 4  ;;  %s55_s22 = int_to_ptr.vmem [resolvable:$true] %s54_s22  ;;  %s76_s24 = int_to_ptr.vmem [resolvable:$true] %s75_s24 }
  0x10   :  { %s2445_s2 = scalar_lea.vmem %s55_s22, 16  ;;  %s2449_s25 = scalar_lea.vmem %s55_s22, 32 }
  0x11   :  { %p2446_p0 = scmp.ne.s32.totalorder %s55_s22, %s2445_s2  ;;  %p2450_p1 = scmp.lt.s32.totalorder %s55_s22, %s55_s22 }
  0x12   :  { %p2451_p2 = scmp.lt.s32.totalorder %s2449_s25, %s2445_s2 }
  0x14   :  { %p2452_p3 = por %p2451_p2, %p2450_p1 }
  0x16   :  { %p2453_p4 = pnand %p2452_p3, %p2446_p0 }
  0x18   :  { %2456 = shalt.err (!%p2453_p4)
}
  0x19   :  { %s3369_s27 = sld [smem:[#allocation37_spill]]  ;;  %s2465_s28 = scalar_lea.vmem %s76_s24, 32 }
  0x1a   :  { %p2466_p5 = scmp.ne.s32.totalorder %s76_s24, %s2465_s28  ;;  %p2470_p6 = scmp.lt.s32.totalorder %s76_s24, %s76_s24 }
  0x1b   :  { %p2471_p7 = scmp.lt.s32.totalorder %s2465_s28, %s2465_s28 }
  0x1d   :  { %p2472_p8 = por %p2471_p7, %p2470_p6 }
  0x1f   :  { %57 = dma.hbm_to_vmem [thread:$0]  %s3369_s27, 16, %s55_s22, [#allocation6]  }
  0x20   :  { %p2473_p9 = pnand %p2472_p8, %p2466_p5 }
  0x22   :  { %2476 = shalt.err (!%p2473_p9)
}
  0x23   :  { %s2757_s4 = smov 16   ;;  %s2758_s29 = smov 1  }
  0x24   :  { %81 = dma.hbm_to_vmem [thread:$0]  %s3346_s5, 32, %s76_s24, [#allocation9], %s2757_s4, %s2757_s4, %s2758_s29  }
  0x25   :  { %s2759_s21 = smov [#allocation11]   ;;  %s2760_s23 = smov [#allocation14]  }
  0x26   :  { %s99_s1 = sshll.u32 %s2759_s21, 4  ;;  %s123_s22 = sshll.u32 %s2760_s23, 4  ;;  %s100_s1 = int_to_ptr.vmem [resolvable:$true] %s99_s1  ;;  %s124_s22 = int_to_ptr.vmem [resolvable:$true] %s123_s22 }
  0x27   :  { %s2485_s2 = scalar_lea.vmem %s100_s1, 32  ;;  %p2490_p11 = scmp.lt.s32.totalorder %s100_s1, %s100_s1 }
  0x28   :  { %p2486_p10 = scmp.ne.s32.totalorder %s100_s1, %s2485_s2  ;;  %p2491_p12 = scmp.lt.s32.totalorder %s2485_s2, %s2485_s2 }
  0x2a   :  { %p2492_p13 = por %p2491_p12, %p2490_p11 }
  0x2c   :  { %p2493_p0 = pnand %p2492_p13, %p2486_p10 }
  0x2e   :  { %2496 = shalt.err (!%p2493_p0)
}
  0x2f   :  { %105 = dma.hbm_to_vmem [thread:$0]  %s3348_s7, 32, %s100_s1, [#allocation12], %s2757_s4, %s2757_s4, %s2758_s29  }
  0x30   :  { %s2505_s5 = scalar_lea.vmem %s124_s22, 32  ;;  %p2510_p2 = scmp.lt.s32.totalorder %s124_s22, %s124_s22 }
  0x31   :  { %p2506_p1 = scmp.ne.s32.totalorder %s124_s22, %s2505_s5  ;;  %p2511_p3 = scmp.lt.s32.totalorder %s2505_s5, %s2505_s5 }
  0x33   :  { %p2512_p4 = por %p2511_p3, %p2510_p2 }
  0x35   :  { %p2513_p5 = pnand %p2512_p4, %p2506_p1 }
  0x37   :  { %2516 = shalt.err (!%p2513_p5)
}
  0x38   :  { %129 = dma.hbm_to_vmem [thread:$0]  %s3350_s9, 32, %s124_s22, [#allocation15], %s2757_s4, %s2757_s4, %s2758_s29  }
  0x39   :  { %s2761_s27 = smov [#allocation17]   ;;  %s2762_s30 = smov [#allocation20]  }
  0x3a   :  { %s147_s28 = sshll.u32 %s2761_s27, 4  ;;  %s173_s0 = sshll.u32 %s2762_s30, 4  ;;  %s148_s28 = int_to_ptr.vmem [resolvable:$true] %s147_s28  ;;  %s174_s0 = int_to_ptr.vmem [resolvable:$true] %s173_s0 }
  0x3b   :  { %s2525_s7 = scalar_lea.vmem %s148_s28, 32  ;;  %p2530_p7 = scmp.lt.s32.totalorder %s148_s28, %s148_s28 }
  0x3c   :  { %p2526_p6 = scmp.ne.s32.totalorder %s148_s28, %s2525_s7  ;;  %p2531_p8 = scmp.lt.s32.totalorder %s2525_s7, %s2525_s7 }
  0x3e   :  { %p2532_p9 = por %p2531_p8, %p2530_p7 }
  0x40   :  { %p2533_p10 = pnand %p2532_p9, %p2526_p6 }
  0x42   :  { %2536 = shalt.err (!%p2533_p10)
}
  0x43   :  { %153 = dma.hbm_to_vmem [thread:$0]  %s3352_s11, 32, %s148_s28, [#allocation18], %s2757_s4, %s2757_s4, %s2758_s29  }
  0x44   :  { %s2545_s9 = scalar_lea.vmem %s174_s0, 32  ;;  %p2550_p12 = scmp.lt.s32.totalorder %s174_s0, %s174_s0 }
  0x45   :  { %p2546_p11 = scmp.ne.s32.totalorder %s174_s0, %s2545_s9  ;;  %p2551_p13 = scmp.lt.s32.totalorder %s2545_s9, %s2545_s9 }
  0x47   :  { %p2552_p0 = por %p2551_p13, %p2550_p12 }
  0x49   :  { %p2553_p1 = pnand %p2552_p0, %p2546_p11 }
  0x4b   :  { %2556 = shalt.err (!%p2553_p1)
}
  0x4c   :  { %179 = dma.hbm_to_vmem [thread:$0]  %s3355_s14, 32, %s174_s0, [#allocation21], %s2757_s4, %s2757_s4, %s2758_s29  }
  0x4d   :  { %s2763_s2 = smov [#allocation2]  }
  0x4e   :  { %s39_s25 = sshll.u32 %s2763_s2, 4  ;;  %s40_s25 = int_to_ptr.vmem [resolvable:$true] %s39_s25 }
  0x4f   :  { %s2565_s3 = scalar_lea.vmem %s40_s25, 256  ;;  %p2570_p3 = scmp.lt.s32.totalorder %s40_s25, %s40_s25 }
  0x50   :  { %p2566_p2 = scmp.ne.s32.totalorder %s40_s25, %s2565_s3  ;;  %p2571_p4 = scmp.lt.s32.totalorder %s2565_s3, %s2565_s3 }
  0x52   :  { %p2572_p5 = por %p2571_p4, %p2570_p3 }
  0x54   :  { %p2573_p6 = pnand %p2572_p5, %p2566_p2 }
  0x56   :  { %2576 = shalt.err (!%p2573_p6)
}
  0x57   :  { %s2764_s11 = smov 128   ;;  %s2765_s5 = smov 8  }
  0x58   :  { %s3370_s27 = sld [smem:[#allocation35_spill]]  ;;  %s2766_s28 = smov [#allocation7]  }
  0x59   :  { %s64_s30 = sshll.u32 %s2766_s28, 4  ;;  %s2767_s14 = smov [#allocation10]   ;;  %s65_s30 = int_to_ptr.vmem [resolvable:$true] %s64_s30 }
  0x5a   :  { %s87_s0 = sshll.u32 %s2767_s14, 4  ;;  %s2585_s7 = scalar_lea.vmem %s65_s30, 16  ;;  %s88_s0 = int_to_ptr.vmem [resolvable:$true] %s87_s0 }
  0x5b   :  { %p2586_p7 = scmp.ne.s32.totalorder %s65_s30, %s2585_s7  ;;  %s2589_s21 = scalar_lea.vmem %s65_s30, 32 }
  0x5c   :  { %p2590_p8 = scmp.lt.s32.totalorder %s65_s30, %s65_s30  ;;  %p2591_p9 = scmp.lt.s32.totalorder %s2589_s21, %s2585_s7 }
  0x5e   :  { %45 = dma.hbm_to_vmem [thread:$0]  %s3370_s27, 256, %s40_s25, [#allocation3], %s2764_s11, %s2764_s11, %s2765_s5  }
  0x5f   :  { %p2592_p10 = por %p2591_p9, %p2590_p8 }
  0x61   :  { %p2593_p11 = pnand %p2592_p10, %p2586_p7 }
  0x63   :  { %2596 = shalt.err (!%p2593_p11)
}
  0x64   :  { %s3371_s23 = sld [smem:[#allocation38_spill]]  ;;  %s2605_s22 = scalar_lea.vmem %s88_s0, 512 }
  0x65   :  { %p2606_p12 = scmp.ne.s32.totalorder %s88_s0, %s2605_s22  ;;  %p2610_p13 = scmp.lt.s32.totalorder %s88_s0, %s88_s0 }
  0x66   :  { %p2611_p0 = scmp.lt.s32.totalorder %s2605_s22, %s2605_s22 }
  0x68   :  { %p2612_p1 = por %p2611_p0, %p2610_p13 }
  0x6a   :  { %67 = dma.hbm_to_vmem [thread:$0]  %s3371_s23, 16, %s65_s30, [#allocation6]  }
  0x6b   :  { %p2613_p2 = pnand %p2612_p1, %p2606_p12 }
  0x6d   :  { %2616 = shalt.err (!%p2613_p2)
}
  0x6e   :  { %s2768_s2 = smov 64   ;;  %s2769_s25 = smov 4  }
  0x6f   :  { %93 = dma.hbm_to_vmem [thread:$0]  %s3347_s6, 512, %s88_s0, [#allocation9], %s2768_s2, %s2768_s2, %s2769_s25  }
  0x70   :  { %s2770_s24 = smov [#allocation13]   ;;  %s2771_s27 = smov [#allocation16]  }
  0x71   :  { %s111_s26 = sshll.u32 %s2770_s24, 4  ;;  %s135_s28 = sshll.u32 %s2771_s27, 4  ;;  %s112_s26 = int_to_ptr.vmem [resolvable:$true] %s111_s26  ;;  %s136_s28 = int_to_ptr.vmem [resolvable:$true] %s135_s28 }
  0x72   :  { %s2625_s30 = scalar_lea.vmem %s112_s26, 32  ;;  %p2630_p4 = scmp.lt.s32.totalorder %s112_s26, %s112_s26 }
  0x73   :  { %p2626_p3 = scmp.ne.s32.totalorder %s112_s26, %s2625_s30  ;;  %p2631_p5 = scmp.lt.s32.totalorder %s2625_s30, %s2625_s30 }
  0x75   :  { %p2632_p6 = por %p2631_p5, %p2630_p4 }
  0x77   :  { %p2633_p7 = pnand %p2632_p6, %p2626_p3 }
  0x79   :  { %2636 = shalt.err (!%p2633_p7)
}
  0x7a   :  { %117 = dma.hbm_to_vmem [thread:$0]  %s3349_s8, 32, %s112_s26, [#allocation12], %s2757_s4, %s2757_s4, %s2758_s29  }
  0x7b   :  { %s2645_s6 = scalar_lea.vmem %s136_s28, 512  ;;  %p2650_p9 = scmp.lt.s32.totalorder %s136_s28, %s136_s28 }
  0x7c   :  { %p2646_p8 = scmp.ne.s32.totalorder %s136_s28, %s2645_s6  ;;  %p2651_p10 = scmp.lt.s32.totalorder %s2645_s6, %s2645_s6 }
  0x7e   :  { %p2652_p11 = por %p2651_p10, %p2650_p9 }
  0x80   :  { %p2653_p12 = pnand %p2652_p11, %p2646_p8 }
  0x82   :  { %2656 = shalt.err (!%p2653_p12)
}
  0x83   :  { %141 = dma.hbm_to_vmem [thread:$0]  %s3351_s10, 512, %s136_s28, [#allocation15], %s2768_s2, %s2768_s2, %s2769_s25  }
  0x84   :  { %s2772_s1 = smov [#allocation19]   ;;  %s2773_s23 = smov [#allocation22]  }
  0x85   :  { %s161_s9 = sshll.u32 %s2772_s1, 4  ;;  %s185_s22 = sshll.u32 %s2773_s23, 4  ;;  %s162_s9 = int_to_ptr.vmem [resolvable:$true] %s161_s9  ;;  %s186_s22 = int_to_ptr.vmem [resolvable:$true] %s185_s22 }
  0x86   :  { %s2665_s8 = scalar_lea.vmem %s162_s9, 32  ;;  %p2670_p0 = scmp.lt.s32.totalorder %s162_s9, %s162_s9 }
  0x87   :  { %p2666_p13 = scmp.ne.s32.totalorder %s162_s9, %s2665_s8  ;;  %p2671_p1 = scmp.lt.s32.totalorder %s2665_s8, %s2665_s8 }
  0x89   :  { %p2672_p2 = por %p2671_p1, %p2670_p0 }
  0x8b   :  { %p2673_p3 = pnand %p2672_p2, %p2666_p13 }
  0x8d   :  { %2676 = shalt.err (!%p2673_p3)
}
  0x8e   :  { %167 = dma.hbm_to_vmem [thread:$0]  %s3354_s13, 32, %s162_s9, [#allocation18], %s2757_s4, %s2757_s4, %s2758_s29  }
  0x8f   :  { %s2685_s10 = scalar_lea.vmem %s186_s22, 32  ;;  %p2690_p5 = scmp.lt.s32.totalorder %s186_s22, %s186_s22 }
  0x90   :  { %p2686_p4 = scmp.ne.s32.totalorder %s186_s22, %s2685_s10  ;;  %p2691_p6 = scmp.lt.s32.totalorder %s2685_s10, %s2685_s10 }
  0x92   :  { %p2692_p7 = por %p2691_p6, %p2690_p5 }
  0x94   :  { %p2693_p8 = pnand %p2692_p7, %p2686_p4 }
  0x96   :  { %2696 = shalt.err (!%p2693_p8)
}
  0x97   :  { %191 = dma.hbm_to_vmem [thread:$0]  %s3356_s15, 32, %s186_s22, [#allocation21], %s2757_s4, %s2757_s4, %s2758_s29  }
  0x98   :  { %s2774_s26 = smov [#allocation23]  }
  0x99   :  { %s200_s27 = sshll.u32 %s2774_s26, 4  ;;  %s201_s27 = int_to_ptr.vmem [resolvable:$true] %s200_s27 }
  0x9a   :  { %s2705_s28 = scalar_lea.vmem %s201_s27, 16  ;;  %s2709_s13 = scalar_lea.vmem %s201_s27, 32 }
  0x9b   :  { %p2706_p9 = scmp.ne.s32.totalorder %s201_s27, %s2705_s28  ;;  %p2710_p10 = scmp.lt.s32.totalorder %s201_s27, %s201_s27 }
  0x9c   :  { %p2711_p11 = scmp.lt.s32.totalorder %s2709_s13, %s2705_s28 }
  0x9e   :  { %p2712_p12 = por %p2711_p11, %p2710_p10 }
  0xa0   :  { %p2713_p13 = pnand %p2712_p12, %p2706_p9 }
  0xa2   :  { %2716 = shalt.err (!%p2713_p13)
}
  0xa3   :  { %203 = dma.hbm_to_vmem [thread:$0]  %s3358_s17, 16, %s201_s27, [#allocation24]  }
  0xa4   :  { %2737 = dma.done.wait [#allocation3], 256  }
  0xa5   :  { %2738 = vsyncadd [#allocation3], 4294967040 }
  0xa6   :  { %2739 = dma.done.wait [#allocation6], 32  }
  0xa7   :  { %2740 = vsyncadd [#allocation6], 4294967264 }
  0xa8   :  { %2741 = dma.done.wait [#allocation9], 544  }
  0xa9   :  { %2742 = vsyncadd [#allocation9], 4294966752 }
  0xaa   :  { %2743 = dma.done.wait [#allocation12], 64  }
  0xab   :  { %2744 = vsyncadd [#allocation12], 4294967232 }
  0xac   :  { %2745 = dma.done.wait [#allocation15], 544  }
  0xad   :  { %2746 = vsyncadd [#allocation15], 4294966752 }
  0xae   :  { %2747 = dma.done.wait [#allocation18], 64  }
  0xaf   :  { %2748 = vsyncadd [#allocation18], 4294967232 }
  0xb0   :  { %2749 = dma.done.wait [#allocation21], 64  }
  0xb1   :  { %2750 = vsyncadd [#allocation21], 4294967232 }
  0xb2   :  { %2751 = dma.done.wait [#allocation24], 16  }
  0xb3   :  { %2752 = vsyncadd [#allocation24], 4294967280  ;;  %vm255_vm0 = vcmask 261120   ;;  %v251_v0 = vld [vmem:[#allocation2] sm:$0xff]  ;;  %v252_v1 = vld [vmem:[#allocation2 + $0x8] sm:$0xff]  ;;  %s3372_s29 = sld [smem:[#allocation39_spill]] }
  0xb4   :  { %v256_v2 = vsel %vm255_vm0, %v251_v0, 0.0  ;;  %v259_v3 = vsel %vm255_vm0, %v252_v1, 0.0  ;;  %v2775_v15 = vmov 0.0   ;;  %vm2776_vm1 = vmmov 0   ;;  %v1953_v25 = vld [vmem:[#allocation5] ss:$0 sm:$0xff] }
  0xb5   :  { %257 = vadd.xlane.f32.xlu0 %v256_v2  ;;  %2101 = vmatprep.subr.bf16.mxu0 %v2775_v15  ;;  %v1954_v29 = vld [vmem:[#allocation7] ss:$0 sm:$0xff]  ;;  %v1955_v35 = vld [vmem:[#allocation8] ss:$0 sm:$0xff]  ;;  %s2777_s0 = smov 104   ;;  %s2778_s21 = smov 112  }
  0xb6   :  { %2105 = vmatprep.mubr.msk.bf16.mxu0 %vm2776_vm1, %v2775_v15  ;;  %s2779_s1 = smov 120   ;;  %vm390_vm2 = vcmask 1043456   ;;  %s2780_s9 = smov 96   ;;  %vm415_vm3 = vcmask 64512   ;;  %vm501_vm4 = vcmask 523264   ;;  %vm696_vm5 = vcmask 130048  }
  0xb7   :  { %s3373_s8 = sld [smem:[#allocation36_spill]]  ;;  %s2781_s6 = smov 24   ;;  %vm698_vm6 = vcmask 195584   ;;  %vm1793_vm7 = vcmask 1040384  }
  0xb9   :  { %260 = vadd.xlane.f32.xlu0 %v259_v3  ;;  %v2319_v14 = vld [vmem:[%s3372_s29 + $0x8] sm:$0xff]   ;;  %v2320_v16 = vld [vmem:[%s3372_s29] sm:$0xff]  }
  0xba   :  { %2102 = vmatpush3.bf16.msra.mxu0 %v2319_v14 }
  0xbb   :  { %2103 = vmatprep.subr.bf16.mxu0 %v2775_v15 }
  0xbd   :  { %v3028_v62 = vld [vmem:[%s3373_s8] sm:$0xff]  ;;  %v3033_v63 = vld [vmem:[%s3373_s8 + $0x10] sm:$0xff]  ;;  %v3039_v3 = vld [vmem:[%s3373_s8 + $0x8] sm:$0xff] }
  0xbe   :  { %2104 = vmatpush3.bf16.msra.mxu0 %v2320_v16  ;;  %v3055_v14 = vld [vmem:[%s3373_s8 + $0x20] sm:$0xff] }
 0x13e   :  { %v258_v4 = vpop.xlane.xlu0 %257 }
 0x13f   :  { %v263_v5 = vmul.f32 0.03125, %v258_v4 }
 0x141   :  { %v265_v6 = vsub.f32 %v251_v0, %v263_v5 }
 0x142   :  { %v261_v7 = vpop.xlane.xlu0 %260 }
 0x143   :  { %v264_v8 = vmul.f32 0.03125, %v261_v7  ;;  %v267_v9 = vmul.f32 %v265_v6, %v265_v6 }
 0x145   :  { %v266_v10 = vsub.f32 %v252_v1, %v264_v8  ;;  %v269_v11 = vsel %vm255_vm0, %v267_v9, 0.0 }
 0x146   :  { %270 = vadd.xlane.f32.xlu1 %v269_v11 }
 0x147   :  { %v268_v12 = vmul.f32 %v266_v10, %v266_v10 }
 0x149   :  { %v272_v13 = vsel %vm255_vm0, %v268_v12, 0.0 }
 0x14a   :  { %273 = vadd.xlane.f32.xlu1 %v272_v13 }
 0x1cf   :  { %v271_v17 = vpop.xlane.xlu1 %270 }
 0x1d0   :  { %v275_v18 = vmul.f32 0.03125, %v271_v17  ;;  %v3060_v17 = vld [vmem:[%s3373_s8 + $0x28] sm:$0xff] }
 0x1d2   :  { %v277_v19 = vadd.f32 1e-12, %v275_v18 }
 0x1d3   :  { %v274_v20 = vpop.xlane.xlu1 %273 }
 0x1d4   :  { %2343 = vrsqrt.f32 %v277_v19  ;;  %v276_v21 = vmul.f32 0.03125, %v274_v20  ;;  %v3067_v20 = vld [vmem:[%s3373_s8 + $0x30] sm:$0xff] }
 0x1d6   :  { %v278_v22 = vadd.f32 1e-12, %v276_v21  ;;  %v3072_v21 = vld [vmem:[%s3373_s8 + $0x38] sm:$0xff] }
 0x1d8   :  { %2345 = vrsqrt.f32 %v278_v22 }
 0x1e1   :  { %v2344_v23 = vpop.eup %2343 }
 0x1e2   :  { %v281_v24 = vmul.f32 %v2344_v23, %v265_v6  ;;  %v3046_v6 = vld [vmem:[%s3373_s8 + $0x18] sm:$0xff]  ;;  %s2782_s8 = smov [#allocation25]  }
 0x1e3   :  { %s1937_s3 = sshll.u32 %s2782_s8, 4  ;;  %s1938_s3 = int_to_ptr.vmem [resolvable:$true] %s1937_s3 }
 0x1e4   :  { %v289_v28 = vmul.f32 %v1953_v25, %v281_v24  ;;  %p2722_p1 = scmp.lt.s32.totalorder %s1938_s3, %s1938_s3 }
 0x1e5   :  { %v2346_v26 = vpop.eup %2345 }
 0x1e6   :  { %v282_v27 = vmul.f32 %v2346_v26, %v266_v10  ;;  %v2973_v31 = vadd.f32 %v1954_v29, %v289_v28 }
 0x1e8   :  { %v290_v30 = vmul.f32 %v1953_v25, %v282_v27 }
 0x1ea   :  { %v2975_v32 = vadd.f32 %v1954_v29, %v290_v30 }
 0x1ec   :  { %v311_v33 = vpack.c.bf16 %v2975_v32, %v2973_v31 }
 0x1ee   :  { %2106 = vmatmul.mubr.msk.bf16.vlgmr.msra.gmra.mxu0 %vm255_vm0, %v311_v33 }
 0x2ae   :  { %v368_v34 = vpop.f32.mrf.mxu0 }
 0x2af   :  { %v369_v38 = vadd.f32 %v1955_v35, %v368_v34 }
 0x2b0   :  { %v2107_v36 = vpop.f32.mrf.mxu0 }
 0x2b2   :  { %v371_v37 = vpop.f32.mrf.mxu0 }
 0x2b3   :  { %v372_v39 = vadd.f32 %v1955_v35, %v371_v37 }
 0x2b4   :  { %v2108_v40 = vpop.f32.mrf.mxu0 }
 0x2b5   :  { %v375_v41 = vpack.c.bf16 %v372_v39, %v369_v38 }
 0x2b7   :  { %388 = vrot.lane.b32.xlu1 %v375_v41, %s2777_s0  ;;  %v377_v42 = vrot.slane %v375_v41, 4 }
 0x2b9   :  { %386 = vrot.lane.b32.xlu0 %v377_v42, %s2778_s21 }
 0x2bb   :  { %384 = vrot.lane.b32.xlu1 %v375_v41, %s2779_s1 }
 0x2bd   :  { %382 = vrot.lane.b32.xlu0 %v377_v42, %s2777_s0 }
 0x2bf   :  { %380 = vrot.lane.b32.xlu1 %v375_v41, %s2778_s21 }
 0x2c3   :  { %378 = vrot.lane.b32.xlu1 %v377_v42, %s2779_s1 }
 0x329   :  { %v389_v43 = vpop.permute.xlu1 %388 }
 0x32b   :  { %v387_v44 = vpop.permute.xlu0 %386 }
 0x32c   :  { %v2987_v45 = vsel %vm390_vm2, %v387_v44, %v389_v43 }
 0x32d   :  { %v385_v46 = vpop.permute.xlu1 %384  ;;  %413 = vrot.lane.b32.xlu0 %v2987_v45, %s2780_s9 }
 0x32e   :  { %v2992_v47 = vsel %vm390_vm2, %v377_v42, %v385_v46 }
 0x32f   :  { %411 = vrot.lane.b32.xlu1 %v2992_v47, %s2780_s9  ;;  %v383_v48 = vpop.permute.xlu0 %382 }
 0x331   :  { %v381_v49 = vpop.permute.xlu1 %380 }
 0x332   :  { %v2997_v50 = vsel %vm390_vm2, %v381_v49, %v383_v48 }
 0x333   :  { %409 = vrot.lane.b32.xlu0 %v2997_v50, %s2780_s9 }
 0x335   :  { %v379_v51 = vpop.permute.xlu1 %378 }
 0x336   :  { %v3002_v52 = vsel %vm390_vm2, %v375_v41, %v379_v51 }
 0x337   :  { %2117 = vmatprep.mubr.msk.bf16.mxu1 %vm415_vm3, %v3002_v52  ;;  %407 = vrot.lane.b32.xlu1 %v3002_v52, %s2780_s9 }
 0x39f   :  { %v414_v53 = vpop.permute.xlu0 %413 }
 0x3a0   :  { %2253 = vmatprep.subr.msk.bf16.mxu1 %vm415_vm3, %v414_v53  ;;  %v434_v54 = vsel %vm415_vm3, %v414_v53, 0 }
 0x3a1   :  { %2110 = vmatpush3.bf16.xpose.msra.mxu1 %v434_v54  ;;  %v412_v55 = vpop.permute.xlu1 %411 }
 0x3a2   :  { %2254 = vmatprep.subr.msk.bf16.mxu1 %vm415_vm3, %v412_v55  ;;  %v431_v56 = vsel %vm415_vm3, %v412_v55, 0 }
 0x3a5   :  { %v410_v57 = vpop.permute.xlu0 %409 }
 0x3a6   :  { %v428_v58 = vsel %vm415_vm3, %v410_v57, 0 }
 0x3a9   :  { %2112 = vmatpush3.bf16.xpose.msra.mxu1 %v431_v56  ;;  %v408_v59 = vpop.permute.xlu1 %407 }
 0x3aa   :  { %2255 = vmatprep.subr.msk.bf16.mxu1 %vm415_vm3, %v410_v57  ;;  %v425_v60 = vsel %vm415_vm3, %v408_v59, 0 }
 0x3b1   :  { %2114 = vmatpush3.bf16.xpose.msra.mxu1 %v428_v58 }
 0x3b2   :  { %2256 = vmatprep.subr.msk.bf16.mxu1 %vm415_vm3, %v408_v59 }
 0x3b9   :  { %2116 = vmatpush3.bf16.xpose.msra.mxu1 %v425_v60 }
 0x3ba   :  { %2157 = vmatprep.subr.bf16.mxu1 %v2775_v15 }
 0x3c0   :  { %2118 = vmatmul.mubr.msk.bf16.vlgmr.msra.gmra.mxu1 %vm415_vm3, %v2997_v50 }
 0x3c1   :  { %2121 = vmatprep.mubr.msk.bf16.mxu1 %vm415_vm3, %v2992_v47 }
 0x3c8   :  { %2122 = vmatmul.mubr.msk.bf16.gmra.mxu1 %vm415_vm3, %v2987_v45 }
 0x3c9   :  { %2165 = vmatprep.mubr.msk.bf16.mxu1 %vm2776_vm1, %v2775_v15 }
 0x480   :  { %v2119_v61 = vpop.f32.mrf.mxu1 }
 0x481   :  { %v479_v4 = vadd.f32 %v2119_v61, %v3033_v63 }
 0x482   :  { %v470_v0 = vpop.f32.mrf.mxu1 }
 0x483   :  { %v471_v1 = vadd.f32 %v470_v0, %v3028_v62  ;;  %v508_v12 = vsel %vm501_vm4, %v479_v4, -inf }
 0x484   :  { %v2120_v2 = vpop.f32.mrf.mxu1 }
 0x485   :  { %v502_v5 = vsel %vm501_vm4, %v471_v1, -inf  ;;  %v482_v10 = vadd.f32 %v2120_v2, %v3046_v6 }
 0x486   :  { %v473_v7 = vpop.f32.mrf.mxu1  ;;  %503 = vmax.xlane.f32.xlu0 %v502_v5 }
 0x487   :  { %v474_v8 = vadd.f32 %v473_v7, %v3039_v3  ;;  %v511_v19 = vsel %vm501_vm4, %v482_v10, -inf }
 0x488   :  { %v2123_v9 = vpop.f32.mrf.mxu1 }
 0x489   :  { %v505_v11 = vsel %vm501_vm4, %v474_v8, -inf  ;;  %v495_v24 = vadd.f32 %v2123_v9, %v3067_v20 }
 0x48a   :  { %v486_v13 = vpop.f32.mrf.mxu1  ;;  %506 = vmax.xlane.f32.xlu1 %v505_v11  ;;  %509 = vmax.xlane.f32.xlu0 %v508_v12 }
 0x48b   :  { %v487_v18 = vadd.f32 %v486_v13, %v3055_v14  ;;  %v520_v29 = vsel %vm501_vm4, %v495_v24, -inf }
 0x48c   :  { %v2124_v16 = vpop.f32.mrf.mxu1 }
 0x48d   :  { %v498_v25 = vadd.f32 %v2124_v16, %v3072_v21  ;;  %v514_v27 = vsel %vm501_vm4, %v487_v18, -inf }
 0x48e   :  { %v489_v22 = vpop.f32.mrf.mxu1  ;;  %512 = vmax.xlane.f32.xlu0 %v511_v19 }
 0x48f   :  { %v490_v23 = vadd.f32 %v489_v22, %v3060_v17  ;;  %v523_v28 = vsel %vm501_vm4, %v498_v25, -inf }
 0x491   :  { %v517_v26 = vsel %vm501_vm4, %v490_v23, -inf }
 0x492   :  { %518 = vmax.xlane.f32.xlu1 %v517_v26  ;;  %515 = vmax.xlane.f32.xlu0 %v514_v27 }
 0x496   :  { %524 = vmax.xlane.f32.xlu1 %v523_v28  ;;  %521 = vmax.xlane.f32.xlu0 %v520_v29 }
 0x50f   :  { %v504_v30 = vpop.xlane.xlu0 %503 }
 0x510   :  { %v526_v33 = vsub.f32 %v471_v1, %v504_v30 }
 0x512   :  { %v534_v39 = vmul.f32 1.442695, %v526_v33 }
 0x513   :  { %v507_v34 = vpop.xlane.xlu1 %506  ;;  %v510_v35 = vpop.xlane.xlu0 %509 }
 0x514   :  { %v528_v36 = vsub.f32 %v479_v4, %v510_v35  ;;  %v527_v37 = vsub.f32 %v474_v8, %v507_v34 }
 0x516   :  { %v538_v38 = vmul.f32 1.442695, %v528_v36  ;;  %v536_v42 = vmul.f32 1.442695, %v527_v37 }
 0x517   :  { %v513_v40 = vpop.xlane.xlu0 %512 }
 0x518   :  { %v529_v41 = vsub.f32 %v482_v10, %v513_v40  ;;  %2347 = vpow2.f32 %v538_v38 }
 0x519   :  { %2349 = vpow2.f32 %v534_v39 }
 0x51a   :  { %v540_v43 = vmul.f32 1.442695, %v529_v41 }
 0x51b   :  { %v516_v44 = vpop.xlane.xlu0 %515  ;;  %v519_v5 = vpop.xlane.xlu1 %518 }
 0x51c   :  { %2351 = vpow2.f32 %v540_v43  ;;  %v530_v46 = vsub.f32 %v487_v18, %v516_v44  ;;  %v531_v9 = vsub.f32 %v490_v23, %v519_v5 }
 0x51d   :  { %2353 = vpow2.f32 %v536_v42 }
 0x51e   :  { %v542_v53 = vmul.f32 1.442695, %v530_v46  ;;  %v544_v11 = vmul.f32 1.442695, %v531_v9 }
 0x51f   :  { %v522_v48 = vpop.xlane.xlu0 %521  ;;  %v525_v7 = vpop.xlane.xlu1 %524 }
 0x520   :  { %v532_v49 = vsub.f32 %v495_v24, %v522_v48  ;;  %v533_v8 = vsub.f32 %v498_v25, %v525_v7 }
 0x522   :  { %v546_v51 = vmul.f32 1.442695, %v532_v49  ;;  %v548_v10 = vmul.f32 1.442695, %v533_v8 }
 0x524   :  { %2355 = vpow2.f32 %v546_v51 }
 0x525   :  { %v3081_v54 = vpop.eup %2347  ;;  %2357 = vpow2.f32 %v542_v53 }
 0x526   :  { %v556_v55 = vsel %vm501_vm4, %v3081_v54, 0.0  ;;  %v2350_v56 = vpop.eup %2349  ;;  %2359 = vpow2.f32 %v548_v10 }
 0x527   :  { %557 = vadd.xlane.f32.xlu0 %v556_v55  ;;  %v550_v60 = vsel %vm501_vm4, %v2350_v56, 0.0  ;;  %2361 = vpow2.f32 %v544_v11 }
 0x529   :  { %v3085_v57 = vpop.eup %2351 }
 0x52a   :  { %v559_v58 = vsel %vm501_vm4, %v3085_v57, 0.0  ;;  %v2354_v59 = vpop.eup %2353 }
 0x52b   :  { %560 = vadd.xlane.f32.xlu1 %v559_v58  ;;  %551 = vadd.xlane.f32.xlu0 %v550_v60  ;;  %v553_v61 = vsel %vm501_vm4, %v2354_v59, 0.0  ;;  %v2322_v60 = vld [vmem:[#allocation10] sm:$0xff]  }
 0x52f   :  { %554 = vadd.xlane.f32.xlu1 %v553_v61 }
 0x531   :  { %v3091_v0 = vpop.eup %2355 }
 0x532   :  { %v568_v1 = vsel %vm501_vm4, %v3091_v0, 0.0  ;;  %v3095_v2 = vpop.eup %2357 }
 0x533   :  { %569 = vadd.xlane.f32.xlu0 %v568_v1  ;;  %v562_v4 = vsel %vm501_vm4, %v3095_v2, 0.0  ;;  %v2360_v12 = vpop.eup %2359 }
 0x534   :  { %v571_v13 = vsel %vm501_vm4, %v2360_v12, 0.0  ;;  %v2362_v16 = vpop.eup %2361 }
 0x537   :  { %563 = vadd.xlane.f32.xlu0 %v562_v4 }
 0x540   :  { %598 = vrot.lane.b32.xlu1 %v2992_v47, %s2768_s2  ;;  %v565_v47 = vsel %vm501_vm4, %v2362_v16, 0.0 }
 0x544   :  { %596 = vrot.lane.b32.xlu1 %v2997_v50, %s2768_s2 }
 0x54d   :  { %600 = vrot.lane.b32.xlu0 %v2987_v45, %s2768_s2 }
 0x568   :  { %572 = vadd.xlane.f32.xlu1 %v571_v13 }
 0x56c   :  { %566 = vadd.xlane.f32.xlu1 %v565_v47 }
 0x57d   :  { %594 = vrot.lane.b32.xlu1 %v3002_v52, %s2768_s2 }
 0x5b0   :  { %v558_v50 = vpop.xlane.xlu0 %557 }
 0x5b4   :  { %v561_v18 = vpop.xlane.xlu1 %560  ;;  %v552_v45 = vpop.xlane.xlu0 %551 }
 0x5b5   :  { %2363 = vrcp.f32 %v552_v45 }
 0x5b8   :  { %v555_v19 = vpop.xlane.xlu1 %554 }
 0x5b9   :  { %2365 = vrcp.f32 %v555_v19 }
 0x5ba   :  { %2367 = vrcp.f32 %v561_v18 }
 0x5bb   :  { %2369 = vrcp.f32 %v558_v50 }
 0x5bc   :  { %v570_v22 = vpop.xlane.xlu0 %569  ;;  %v599_v25 = vpop.permute.xlu1 %598 }
 0x5c0   :  { %v564_v23 = vpop.xlane.xlu0 %563  ;;  %v597_v33 = vpop.permute.xlu1 %596 }
 0x5c2   :  { %v2364_v24 = vpop.eup %2363 }
 0x5c3   :  { %v575_v28 = vmul.f32 %v2364_v24, %v2350_v56 }
 0x5c4   :  { %v601_v26 = vpop.permute.xlu0 %600 }
 0x5c5   :  { %2125 = vmatprep.subr.bf16.mxu0 %v601_v26 }
 0x5c6   :  { %v2366_v27 = vpop.eup %2365  ;;  %2126 = vmatpush3.bf16.msra.mxu0 %v601_v26  ;;  %v1967_v26 = vld [vmem:[#allocation11] ss:$0 sm:$0xff] }
 0x5c7   :  { %v577_v29 = vmul.f32 %v2366_v27, %v2354_v59  ;;  %2127 = vmatprep.subr.bf16.mxu0 %v599_v25  ;;  %v2368_v34 = vpop.eup %2367 }
 0x5c8   :  { %v2370_v36 = vpop.eup %2369  ;;  %v581_v37 = vmul.f32 %v2368_v34, %v3085_v57 }
 0x5c9   :  { %v590_v30 = vpack.c.bf16 %v577_v29, %v575_v28  ;;  %v579_v39 = vmul.f32 %v2370_v36, %v3081_v54  ;;  %v2321_v54 = vld [vmem:[#allocation10 + $0x8] sm:$0xff]  }
 0x5ca   :  { %2128 = vmatpush3.bf16.msra.mxu0 %v599_v25 }
 0x5cb   :  { %2133 = vmatprep.mubr.msk.bf16.mxu0 %vm501_vm4, %v590_v30  ;;  %2129 = vmatprep.subr.bf16.mxu0 %v597_v33  ;;  %v591_v40 = vpack.c.bf16 %v581_v37, %v579_v39 }
 0x5ce   :  { %2130 = vmatpush3.bf16.msra.mxu0 %v597_v33 }
 0x5f1   :  { %v573_v52 = vpop.xlane.xlu1 %572 }
 0x5f2   :  { %2371 = vrcp.f32 %v573_v52 }
 0x5f3   :  { %2373 = vrcp.f32 %v564_v23 }
 0x5f4   :  { %2375 = vrcp.f32 %v570_v22 }
 0x5f5   :  { %v567_v35 = vpop.xlane.xlu1 %566 }
 0x5f6   :  { %2377 = vrcp.f32 %v567_v35 }
 0x5f9   :  { %v595_v38 = vpop.permute.xlu1 %594 }
 0x5fa   :  { %2131 = vmatprep.subr.bf16.mxu0 %v595_v38 }
 0x5fb   :  { %2132 = vmatpush3.bf16.msra.mxu0 %v595_v38 }
 0x5fc   :  { %2141 = vmatprep.subr.bf16.mxu0 %v2775_v15 }
 0x5fe   :  { %2134 = vmatmul.mubr.msk.bf16.vlgmr.msra.gmra.mxu0 %vm501_vm4, %v591_v40 }
 0x5ff   :  { %v2372_v41 = vpop.eup %2371  ;;  %2142 = vmatpush3.bf16.msra.mxu0 %v2321_v54 }
 0x600   :  { %v2374_v42 = vpop.eup %2373  ;;  %v589_v46 = vmul.f32 %v2372_v41, %v2360_v12  ;;  %2143 = vmatprep.subr.bf16.mxu0 %v2775_v15 }
 0x601   :  { %v2376_v43 = vpop.eup %2375  ;;  %v583_v48 = vmul.f32 %v2374_v42, %v3095_v2 }
 0x602   :  { %v587_v51 = vmul.f32 %v2376_v43, %v3091_v0 }
 0x603   :  { %v2378_v44 = vpop.eup %2377  ;;  %2144 = vmatpush3.bf16.msra.mxu0 %v2322_v60  ;;  %v1971_v60 = vld [vmem:[#allocation13] ss:$0 sm:$0xff] }
 0x604   :  { %v585_v49 = vmul.f32 %v2378_v44, %v2362_v16  ;;  %v593_v55 = vpack.c.bf16 %v589_v46, %v587_v51  ;;  %2149 = vmatprep.subr.bf16.mxu0 %v2775_v15 }
 0x606   :  { %v592_v53 = vpack.c.bf16 %v585_v49, %v583_v48  ;;  %v2323_v49 = vld [vmem:[#allocation16 + $0x8] sm:$0xff]  }
 0x608   :  { %2137 = vmatprep.mubr.msk.bf16.mxu0 %vm501_vm4, %v592_v53 }
 0x609   :  { %2138 = vmatmul.mubr.msk.bf16.gmra.mxu0 %vm501_vm4, %v593_v55 }
 0x60a   :  { %2145 = vmatprep.mubr.msk.bf16.mxu0 %vm2776_vm1, %v2775_v15 }
 0x6be   :  { %v2135_v56 = vpop.f32.mrf.mxu0 }
 0x6c0   :  { %v652_v57 = vpop.f32.mrf.mxu0 }
 0x6c2   :  { %v2136_v58 = vpop.f32.mrf.mxu0 }
 0x6c4   :  { %v655_v59 = vpop.f32.mrf.mxu0 }
 0x6c9   :  { %v2139_v61 = vpop.f32.mrf.mxu0 }
 0x6ca   :  { %v2289_v0 = vpack.i.bf16 %v2139_v61, %v2135_v56 }
 0x6cb   :  { %v668_v1 = vpop.f32.mrf.mxu0 }
 0x6cc   :  { %2290 = vrot.lane.b32.xlu1 %v2289_v0, %s2757_s4 }
 0x6cd   :  { %v2140_v2 = vpop.f32.mrf.mxu0 }
 0x6ce   :  { %v2299_v7 = vpack.i.bf16 %v2140_v2, %v2136_v58  ;;  %v1972_v2 = vld [vmem:[#allocation14] ss:$0 sm:$0xff] }
 0x6cf   :  { %v671_v4 = vpop.f32.mrf.mxu0 }
 0x6d0   :  { %v2294_v5 = vpack.i.bf16 %v671_v4, %v655_v59 }
 0x6d2   :  { %2295 = vrot.lane.b32.xlu0 %v2294_v5, %s2765_s5 }
 0x6d6   :  { %2300 = vrot.lane.b32.xlu0 %v2299_v7, %s2781_s6 }
 0x73e   :  { %v2291_v9 = vpop.permute.xlu1 %2290 }
 0x73f   :  { %v2293_v16 = vunpack.i.h.bf16 %v2291_v9  ;;  %v2292_v47 = vunpack.i.l.bf16 %v2291_v9  ;;  %v2325_v9 = vld [vmem:[%s3353_s12 + $0x18] sm:$0xff]  }
 0x740   :  { %2158 = vmatpush3.bf16.msra.mxu1 %v2325_v9 }
 0x741   :  { %2159 = vmatprep.subr.bf16.mxu1 %v2775_v15 }
 0x744   :  { %v2296_v8 = vpop.permute.xlu0 %2295 }
 0x745   :  { %v2298_v10 = vunpack.i.h.bf16 %v2296_v8  ;;  %v2297_v11 = vunpack.i.l.bf16 %v2296_v8 }
 0x747   :  { %v712_v12 = vsel %vm415_vm3, %v668_v1, %v2298_v10  ;;  %v695_v13 = vsel %vm415_vm3, %v652_v57, %v2297_v11  ;;  %v2326_v10 = vld [vmem:[%s3353_s12 + $0x10] sm:$0xff]   ;;  %v2327_v11 = vld [vmem:[%s3353_s12 + $0x8] sm:$0xff]  }
 0x748   :  { %v2301_v50 = vpop.permute.xlu0 %2300  ;;  %v697_v19 = vsel %vm696_vm5, %v695_v13, %v2292_v47  ;;  %v713_v22 = vsel %vm696_vm5, %v712_v12, %v2293_v16  ;;  %2160 = vmatpush3.bf16.msra.mxu1 %v2326_v10  ;;  %v2328_v12 = vld [vmem:[%s3353_s12] sm:$0xff]   ;;  %v1973_v13 = vld [vmem:[#allocation17] ss:$0 sm:$0xff] }
 0x749   :  { %v2303_v18 = vunpack.i.h.bf16 %v2301_v50  ;;  %v2302_v45 = vunpack.i.l.bf16 %v2301_v50  ;;  %2161 = vmatprep.subr.bf16.mxu1 %v2775_v15 }
 0x74b   :  { %v699_v23 = vsel %vm698_vm6, %v697_v19, %v2302_v45  ;;  %v714_v24 = vsel %vm698_vm6, %v713_v22, %v2303_v18 }
 0x74c   :  { %v719_v25 = vpack.c.bf16 %v714_v24, %v699_v23  ;;  %2162 = vmatpush3.bf16.msra.mxu1 %v2327_v11 }
 0x74d   :  { %2163 = vmatprep.subr.bf16.mxu1 %v2775_v15 }
 0x74e   :  { %2146 = vmatmul.mubr.msk.bf16.vlgmr.msra.gmra.mxu0 %vm255_vm0, %v719_v25 }
 0x74f   :  { %2153 = vmatprep.mubr.msk.bf16.mxu0 %vm2776_vm1, %v2775_v15  ;;  %2150 = vmatpush3.bf16.msra.mxu0 %v2323_v49 }
 0x750   :  { %2151 = vmatprep.subr.bf16.mxu0 %v2775_v15  ;;  %2164 = vmatpush3.bf16.msra.mxu1 %v2328_v12 }
 0x80e   :  { %v776_v27 = vpop.f32.mrf.mxu0 }
 0x80f   :  { %v777_v28 = vadd.f32 %v1967_v26, %v776_v27 }
 0x810   :  { %v2147_v29 = vpop.f32.mrf.mxu0 }
 0x811   :  { %v783_v30 = vadd.f32 %v777_v28, %v2973_v31 }
 0x812   :  { %v779_v33 = vpop.f32.mrf.mxu0 }
 0x813   :  { %v780_v52 = vadd.f32 %v1967_v26, %v779_v33  ;;  %v787_v34 = vsel %vm255_vm0, %v783_v30, 0.0 }
 0x814   :  { %788 = vadd.xlane.f32.xlu1 %v787_v34  ;;  %v2148_v35 = vpop.f32.mrf.mxu0 }
 0x815   :  { %v784_v36 = vadd.f32 %v780_v52, %v2975_v32  ;;  %v2324_v32 = vld [vmem:[#allocation16] sm:$0xff]  }
 0x816   :  { %2152 = vmatpush3.bf16.msra.mxu0 %v2324_v32 }
 0x817   :  { %v790_v37 = vsel %vm255_vm0, %v784_v36, 0.0  ;;  %2169 = vmatprep.subr.bf16.mxu0 %v2775_v15 }
 0x818   :  { %791 = vadd.xlane.f32.xlu0 %v790_v37 }
 0x89d   :  { %v789_v38 = vpop.xlane.xlu1 %788 }
 0x89e   :  { %v793_v39 = vmul.f32 0.03125, %v789_v38 }
 0x8a0   :  { %v795_v40 = vsub.f32 %v783_v30, %v793_v39 }
 0x8a1   :  { %v792_v41 = vpop.xlane.xlu0 %791 }
 0x8a2   :  { %v794_v42 = vmul.f32 0.03125, %v792_v41  ;;  %v797_v43 = vmul.f32 %v795_v40, %v795_v40 }
 0x8a4   :  { %v796_v44 = vsub.f32 %v784_v36, %v794_v42  ;;  %v799_v31 = vsel %vm255_vm0, %v797_v43, 0.0  ;;  %v1977_v42 = vld [vmem:[#allocation19] ss:$0 sm:$0xff] }
 0x8a5   :  { %800 = vadd.xlane.f32.xlu0 %v799_v31 }
 0x8a6   :  { %v798_v46 = vmul.f32 %v796_v44, %v796_v44 }
 0x8a8   :  { %v802_v48 = vsel %vm255_vm0, %v798_v46, 0.0 }
 0x8a9   :  { %803 = vadd.xlane.f32.xlu0 %v802_v48 }
 0x92e   :  { %v801_v51 = vpop.xlane.xlu0 %800 }
 0x92f   :  { %v805_v53 = vmul.f32 0.03125, %v801_v51 }
 0x931   :  { %v807_v55 = vadd.f32 1e-12, %v805_v53 }
 0x932   :  { %v804_v54 = vpop.xlane.xlu0 %803 }
 0x933   :  { %2379 = vrsqrt.f32 %v807_v55  ;;  %v806_v56 = vmul.f32 0.03125, %v804_v54 }
 0x935   :  { %v808_v57 = vadd.f32 1e-12, %v806_v56 }
 0x937   :  { %2381 = vrsqrt.f32 %v808_v57 }
 0x940   :  { %v2380_v58 = vpop.eup %2379 }
 0x941   :  { %v811_v59 = vmul.f32 %v2380_v58, %v795_v40 }
 0x943   :  { %v819_v1 = vmul.f32 %v1971_v60, %v811_v59 }
 0x944   :  { %v2382_v61 = vpop.eup %2381 }
 0x945   :  { %v812_v0 = vmul.f32 %v2382_v61, %v796_v44  ;;  %v827_v5 = vadd.f32 %v1972_v2, %v819_v1 }
 0x947   :  { %v820_v4 = vmul.f32 %v1971_v60, %v812_v0 }
 0x949   :  { %v828_v7 = vadd.f32 %v1972_v2, %v820_v4  ;;  %v2329_v4 = vld [vmem:[%s3372_s29 + $0x18] sm:$0xff]  }
 0x94b   :  { %v833_v8 = vpack.c.bf16 %v828_v7, %v827_v5 }
 0x94d   :  { %2154 = vmatmul.mubr.msk.bf16.vlgmr.msra.gmra.mxu0 %vm255_vm0, %v833_v8 }
 0x94e   :  { %2173 = vmatprep.mubr.msk.bf16.mxu0 %vm2776_vm1, %v2775_v15  ;;  %2170 = vmatpush3.bf16.msra.mxu0 %v2329_v4 }
 0x94f   :  { %2171 = vmatprep.subr.bf16.mxu0 %v2775_v15 }
 0xa0d   :  { %v890_v16 = vpop.f32.mrf.mxu0 }
 0xa0e   :  { %v891_v47 = vadd.f32 %v1973_v13, %v890_v16 }
 0xa0f   :  { %v2155_v50 = vpop.f32.mrf.mxu0 }
 0xa10   :  { %v897_v18 = vmul.f32 %v891_v47, %v891_v47 }
 0xa11   :  { %v893_v45 = vpop.f32.mrf.mxu0 }
 0xa12   :  { %v899_v19 = vmul.f32 %v897_v18, %v891_v47  ;;  %v894_v22 = vadd.f32 %v1973_v13, %v893_v45 }
 0xa13   :  { %v2156_v23 = vpop.f32.mrf.mxu0 }
 0xa14   :  { %v901_v24 = vmul.f32 0.044715, %v899_v19  ;;  %v898_v25 = vmul.f32 %v894_v22, %v894_v22  ;;  %v1984_v19 = vld [vmem:[#allocation22] ss:$0 sm:$0xff] }
 0xa16   :  { %v903_v26 = vadd.f32 %v901_v24, %v891_v47  ;;  %v900_v27 = vmul.f32 %v898_v25, %v894_v22 }
 0xa18   :  { %v905_v28 = vmul.f32 0.7978846, %v903_v26  ;;  %v902_v29 = vmul.f32 0.044715, %v900_v27  ;;  %v1989_v27 = vld [vmem:[#allocation8 + $0x1] ss:$0 sm:$0xff] }
 0xa1a   :  { %2383 = vtanh.f32 %v905_v28  ;;  %v904_v30 = vadd.f32 %v902_v29, %v894_v22 }
 0xa1c   :  { %v906_v33 = vmul.f32 0.7978846, %v904_v30 }
 0xa1e   :  { %2385 = vtanh.f32 %v906_v33 }
 0xa27   :  { %v2384_v52 = vpop.eup %2383 }
 0xa28   :  { %v909_v34 = vadd.f32 1.0, %v2384_v52 }
 0xa2a   :  { %v911_v36 = vmul.f32 0.5, %v909_v34 }
 0xa2b   :  { %v2386_v35 = vpop.eup %2385 }
 0xa2c   :  { %v910_v37 = vadd.f32 1.0, %v2386_v35  ;;  %v913_v39 = vmul.f32 %v911_v36, %v891_v47  ;;  %v1983_v47 = vld [vmem:[#allocation20] ss:$0 sm:$0xff] }
 0xa2e   :  { %v912_v38 = vmul.f32 0.5, %v910_v37 }
 0xa30   :  { %v914_v40 = vmul.f32 %v912_v38, %v894_v22 }
 0xa32   :  { %v923_v41 = vpack.c.bf16 %v914_v40, %v913_v39 }
 0xa34   :  { %2166 = vmatmul.mubr.msk.bf16.vlgmr.msra.gmra.mxu1 %vm501_vm4, %v923_v41 }
 0xaf4   :  { %v992_v43 = vpop.f32.mrf.mxu1 }
 0xaf5   :  { %v993_v44 = vadd.f32 %v1977_v42, %v992_v43 }
 0xaf6   :  { %v2167_v31 = vpop.f32.mrf.mxu1 }
 0xaf7   :  { %v999_v46 = vadd.f32 %v993_v44, %v827_v5  ;;  %v2330_v5 = vld [vmem:[%s3372_s29 + $0x10] sm:$0xff]  }
 0xaf8   :  { %v995_v48 = vpop.f32.mrf.mxu1  ;;  %2172 = vmatpush3.bf16.msra.mxu0 %v2330_v5 }
 0xaf9   :  { %v996_v49 = vadd.f32 %v1977_v42, %v995_v48  ;;  %v1003_v32 = vsel %vm255_vm0, %v999_v46, 0.0 }
 0xafa   :  { %1004 = vadd.xlane.f32.xlu1 %v1003_v32  ;;  %v2168_v51 = vpop.f32.mrf.mxu1 }
 0xafb   :  { %v1000_v53 = vadd.f32 %v996_v49, %v828_v7 }
 0xafd   :  { %v1006_v55 = vsel %vm255_vm0, %v1000_v53, 0.0 }
 0xafe   :  { %1007 = vadd.xlane.f32.xlu0 %v1006_v55 }
 0xb83   :  { %v1005_v54 = vpop.xlane.xlu1 %1004 }
 0xb84   :  { %v1009_v56 = vmul.f32 0.03125, %v1005_v54 }
 0xb86   :  { %v1011_v57 = vsub.f32 %v999_v46, %v1009_v56 }
 0xb87   :  { %v1008_v58 = vpop.xlane.xlu0 %1007 }
 0xb88   :  { %v1010_v59 = vmul.f32 0.03125, %v1008_v58  ;;  %v1013_v60 = vmul.f32 %v1011_v57, %v1011_v57 }
 0xb8a   :  { %v1012_v61 = vsub.f32 %v1000_v53, %v1010_v59  ;;  %v1015_v0 = vsel %vm255_vm0, %v1013_v60, 0.0 }
 0xb8b   :  { %1016 = vadd.xlane.f32.xlu1 %v1015_v0 }
 0xb8c   :  { %v1014_v1 = vmul.f32 %v1012_v61, %v1012_v61 }
 0xb8e   :  { %v1018_v2 = vsel %vm255_vm0, %v1014_v1, 0.0 }
 0xb8f   :  { %1019 = vadd.xlane.f32.xlu0 %v1018_v2 }
 0xc14   :  { %v1017_v7 = vpop.xlane.xlu1 %1016 }
 0xc15   :  { %v1021_v8 = vmul.f32 0.03125, %v1017_v7 }
 0xc17   :  { %v1023_v9 = vadd.f32 1e-12, %v1021_v8 }
 0xc18   :  { %v1020_v10 = vpop.xlane.xlu0 %1019 }
 0xc19   :  { %2387 = vrsqrt.f32 %v1023_v9  ;;  %v1022_v11 = vmul.f32 0.03125, %v1020_v10 }
 0xc1b   :  { %v1024_v12 = vadd.f32 1e-12, %v1022_v11 }
 0xc1d   :  { %2389 = vrsqrt.f32 %v1024_v12 }
 0xc26   :  { %v2388_v13 = vpop.eup %2387 }
 0xc27   :  { %v1027_v16 = vmul.f32 %v2388_v13, %v1011_v57 }
 0xc29   :  { %v1035_v45 = vmul.f32 %v1983_v47, %v1027_v16 }
 0xc2a   :  { %v2390_v50 = vpop.eup %2389 }
 0xc2b   :  { %v1028_v18 = vmul.f32 %v2390_v50, %v1012_v61  ;;  %v3172_v23 = vadd.f32 %v1984_v19, %v1035_v45 }
 0xc2d   :  { %v1036_v22 = vmul.f32 %v1983_v47, %v1028_v18 }
 0xc2f   :  { %v3174_v24 = vadd.f32 %v1984_v19, %v1036_v22 }
 0xc31   :  { %v1050_v25 = vpack.c.bf16 %v3174_v24, %v3172_v23 }
 0xc33   :  { %2174 = vmatmul.mubr.msk.bf16.vlgmr.msra.gmra.mxu0 %vm255_vm0, %v1050_v25 }
 0xcf3   :  { %v1108_v26 = vpop.f32.mrf.mxu0 }
 0xcf4   :  { %v1109_v30 = vadd.f32 %v1989_v27, %v1108_v26 }
 0xcf5   :  { %v2175_v28 = vpop.f32.mrf.mxu0 }
 0xcf7   :  { %v1111_v29 = vpop.f32.mrf.mxu0 }
 0xcf8   :  { %v1112_v33 = vadd.f32 %v1989_v27, %v1111_v29 }
 0xcf9   :  { %v2176_v52 = vpop.f32.mrf.mxu0 }
 0xcfa   :  { %v1115_v34 = vpack.c.bf16 %v1112_v33, %v1109_v30 }
 0xcfc   :  { %1128 = vrot.lane.b32.xlu0 %v1115_v34, %s2777_s0  ;;  %v1117_v35 = vrot.slane %v1115_v34, 4 }
 0xcfe   :  { %1126 = vrot.lane.b32.xlu1 %v1117_v35, %s2778_s21 }
 0xd00   :  { %1118 = vrot.lane.b32.xlu0 %v1117_v35, %s2779_s1 }
 0xd02   :  { %1124 = vrot.lane.b32.xlu1 %v1115_v34, %s2779_s1 }
 0xd06   :  { %1120 = vrot.lane.b32.xlu1 %v1115_v34, %s2778_s21 }
 0xd0a   :  { %1122 = vrot.lane.b32.xlu1 %v1117_v35, %s2777_s0 }
 0xd6e   :  { %v1129_v36 = vpop.permute.xlu0 %1128 }
 0xd70   :  { %v1127_v37 = vpop.permute.xlu1 %1126 }
 0xd71   :  { %v3186_v38 = vsel %vm390_vm2, %v1127_v37, %v1129_v36 }
 0xd72   :  { %v1119_v39 = vpop.permute.xlu0 %1118  ;;  %1152 = vrot.lane.b32.xlu1 %v3186_v38, %s2780_s9 }
 0xd73   :  { %v3191_v40 = vsel %vm390_vm2, %v1115_v34, %v1119_v39 }
 0xd74   :  { %2185 = vmatprep.mubr.msk.bf16.mxu1 %vm415_vm3, %v3191_v40  ;;  %v1125_v41 = vpop.permute.xlu1 %1124 }
 0xd75   :  { %v3196_v42 = vsel %vm390_vm2, %v1117_v35, %v1125_v41 }
 0xd76   :  { %1150 = vrot.lane.b32.xlu0 %v3196_v42, %s2780_s9 }
 0xd78   :  { %v1121_v43 = vpop.permute.xlu1 %1120 }
 0xd7a   :  { %1146 = vrot.lane.b32.xlu0 %v3191_v40, %s2780_s9 }
 0xd7c   :  { %v1123_v44 = vpop.permute.xlu1 %1122 }
 0xd7d   :  { %v3203_v31 = vsel %vm390_vm2, %v1121_v43, %v1123_v44 }
 0xd7e   :  { %1148 = vrot.lane.b32.xlu1 %v3203_v31, %s2780_s9 }
 0xde4   :  { %v1153_v46 = vpop.permute.xlu1 %1152 }
 0xde5   :  { %v1172_v48 = vsel %vm415_vm3, %v1153_v46, 0  ;;  %2257 = vmatprep.subr.msk.bf16.mxu1 %vm415_vm3, %v1153_v46 }
 0xde6   :  { %2178 = vmatpush3.bf16.xpose.msra.mxu1 %v1172_v48 }
 0xde8   :  { %v1151_v49 = vpop.permute.xlu0 %1150 }
 0xde9   :  { %2258 = vmatprep.subr.msk.bf16.mxu1 %vm415_vm3, %v1151_v49  ;;  %v1169_v32 = vsel %vm415_vm3, %v1151_v49, 0 }
 0xdec   :  { %v1147_v55 = vpop.permute.xlu0 %1146 }
 0xded   :  { %v1163_v54 = vsel %vm415_vm3, %v1147_v55, 0 }
 0xdee   :  { %2180 = vmatpush3.bf16.xpose.msra.mxu1 %v1169_v32 }
 0xdf0   :  { %v1149_v51 = vpop.permute.xlu1 %1148 }
 0xdf1   :  { %2259 = vmatprep.subr.msk.bf16.mxu1 %vm415_vm3, %v1149_v51  ;;  %v1166_v53 = vsel %vm415_vm3, %v1149_v51, 0 }
 0xdf6   :  { %2182 = vmatpush3.bf16.xpose.msra.mxu1 %v1166_v53 }
 0xdf7   :  { %2260 = vmatprep.subr.msk.bf16.mxu1 %vm415_vm3, %v1147_v55 }
 0xdfe   :  { %2184 = vmatpush3.bf16.xpose.msra.mxu1 %v1163_v54 }
 0xdff   :  { %2225 = vmatprep.subr.bf16.mxu1 %v2775_v15 }
 0xe05   :  { %2186 = vmatmul.mubr.msk.bf16.vlgmr.msra.gmra.mxu1 %vm415_vm3, %v3203_v31 }
 0xe06   :  { %2189 = vmatprep.mubr.msk.bf16.mxu1 %vm415_vm3, %v3196_v42 }
 0xe0d   :  { %2190 = vmatmul.mubr.msk.bf16.gmra.mxu1 %vm415_vm3, %v3186_v38 }
 0xe0e   :  { %2233 = vmatprep.mubr.msk.bf16.mxu1 %vm2776_vm1, %v2775_v15 }
 0xec5   :  { %v2187_v56 = vpop.f32.mrf.mxu1 }
 0xec6   :  { %v1217_v57 = vadd.f32 %v2187_v56, %v3033_v63 }
 0xec7   :  { %v1208_v58 = vpop.f32.mrf.mxu1 }
 0xec8   :  { %v1209_v59 = vadd.f32 %v1208_v58, %v3028_v62  ;;  %v1245_v60 = vsel %vm501_vm4, %v1217_v57, -inf }
 0xec9   :  { %1246 = vmax.xlane.f32.xlu0 %v1245_v60  ;;  %v2188_v61 = vpop.f32.mrf.mxu1 }
 0xeca   :  { %v1239_v0 = vsel %vm501_vm4, %v1209_v59, -inf  ;;  %v1220_v5 = vadd.f32 %v2188_v61, %v3046_v6 }
 0xecb   :  { %v1211_v1 = vpop.f32.mrf.mxu1  ;;  %1240 = vmax.xlane.f32.xlu1 %v1239_v0 }
 0xecc   :  { %v1212_v2 = vadd.f32 %v1211_v1, %v3039_v3  ;;  %v1248_v10 = vsel %vm501_vm4, %v1220_v5, -inf }
 0xecd   :  { %v2191_v4 = vpop.f32.mrf.mxu1 }
 0xece   :  { %v1242_v7 = vsel %vm501_vm4, %v1212_v2, -inf  ;;  %v1233_v9 = vadd.f32 %v2191_v4, %v3067_v20 }
 0xecf   :  { %v1224_v8 = vpop.f32.mrf.mxu1  ;;  %1243 = vmax.xlane.f32.xlu0 %v1242_v7 }
 0xed0   :  { %v1225_v63 = vadd.f32 %v1224_v8, %v3055_v14  ;;  %v1257_v16 = vsel %vm501_vm4, %v1233_v9, -inf }
 0xed1   :  { %v2192_v62 = vpop.f32.mrf.mxu1 }
 0xed2   :  { %v1251_v11 = vsel %vm501_vm4, %v1225_v63, -inf  ;;  %v1236_v6 = vadd.f32 %v2192_v62, %v3072_v21 }
 0xed3   :  { %v1227_v12 = vpop.f32.mrf.mxu1  ;;  %1249 = vmax.xlane.f32.xlu0 %v1248_v10  ;;  %1252 = vmax.xlane.f32.xlu1 %v1251_v11 }
 0xed4   :  { %v1228_v3 = vadd.f32 %v1227_v12, %v3060_v17  ;;  %v1260_v14 = vsel %vm501_vm4, %v1236_v6, -inf }
 0xed6   :  { %v1254_v13 = vsel %vm501_vm4, %v1228_v3, -inf }
 0xed7   :  { %1255 = vmax.xlane.f32.xlu0 %v1254_v13  ;;  %1258 = vmax.xlane.f32.xlu1 %v1257_v16 }
 0xedb   :  { %1261 = vmax.xlane.f32.xlu0 %v1260_v14 }
 0xee8   :  { %1337 = vrot.lane.b32.xlu1 %v3186_v38, %s2768_s2 }
 0xf52   :  { %v1247_v20 = vpop.xlane.xlu0 %1246 }
 0xf53   :  { %v1265_v47 = vsub.f32 %v1217_v57, %v1247_v20 }
 0xf54   :  { %v1241_v50 = vpop.xlane.xlu1 %1240 }
 0xf55   :  { %v1275_v18 = vmul.f32 1.442695, %v1265_v47  ;;  %v1263_v45 = vsub.f32 %v1209_v59, %v1241_v50 }
 0xf57   :  { %2391 = vpow2.f32 %v1275_v18  ;;  %v1271_v17 = vmul.f32 1.442695, %v1263_v45 }
 0xf58   :  { %v1244_v21 = vpop.xlane.xlu0 %1243 }
 0xf59   :  { %2393 = vpow2.f32 %v1271_v17  ;;  %v1264_v19 = vsub.f32 %v1212_v2, %v1244_v21 }
 0xf5b   :  { %v1273_v27 = vmul.f32 1.442695, %v1264_v19 }
 0xf5c   :  { %v1250_v22 = vpop.xlane.xlu0 %1249  ;;  %v1253_v25 = vpop.xlane.xlu1 %1252 }
 0xf5d   :  { %v1266_v26 = vsub.f32 %v1220_v5, %v1250_v22  ;;  %v1267_v29 = vsub.f32 %v1225_v63, %v1253_v25 }
 0xf5f   :  { %v1277_v28 = vmul.f32 1.442695, %v1266_v26  ;;  %v1279_v37 = vmul.f32 1.442695, %v1267_v29 }
 0xf60   :  { %v1256_v30 = vpop.xlane.xlu0 %1255  ;;  %v1259_v33 = vpop.xlane.xlu1 %1258 }
 0xf61   :  { %2395 = vpow2.f32 %v1277_v28  ;;  %v1269_v52 = vsub.f32 %v1233_v9, %v1259_v33  ;;  %v1268_v34 = vsub.f32 %v1228_v3, %v1256_v30 }
 0xf62   :  { %2397 = vpow2.f32 %v1273_v27  ;;  %v2331_v27 = vld [vmem:[#allocation10 + $0x18] sm:$0xff]  }
 0xf63   :  { %v1283_v35 = vmul.f32 1.442695, %v1269_v52  ;;  %v1281_v46 = vmul.f32 1.442695, %v1268_v34  ;;  %v2332_v52 = vld [vmem:[#allocation10 + $0x10] sm:$0xff]  }
 0xf64   :  { %v3242_v36 = vpop.eup %2391  ;;  %v1262_v38 = vpop.xlane.xlu0 %1261 }
 0xf65   :  { %v1338_v39 = vpop.permute.xlu1 %1337  ;;  %v1270_v41 = vsub.f32 %v1236_v6, %v1262_v38  ;;  %v1293_v43 = vsel %vm501_vm4, %v3242_v36, 0.0  ;;  %2399 = vpow2.f32 %v1283_v35 }
 0xf66   :  { %2193 = vmatprep.subr.bf16.mxu0 %v1338_v39  ;;  %v2394_v44 = vpop.eup %2393  ;;  %1294 = vadd.xlane.f32.xlu1 %v1293_v43  ;;  %2401 = vpow2.f32 %v1279_v37 }
 0xf67   :  { %2194 = vmatpush3.bf16.msra.mxu0 %v1338_v39  ;;  %v1285_v48 = vmul.f32 1.442695, %v1270_v41  ;;  %v1287_v49 = vsel %vm501_vm4, %v2394_v44, 0.0 }
 0xf69   :  { %2403 = vpow2.f32 %v1285_v48 }
 0xf6a   :  { %1288 = vadd.xlane.f32.xlu1 %v1287_v49  ;;  %2405 = vpow2.f32 %v1281_v46 }
 0xf6e   :  { %v2396_v32 = vpop.eup %2395 }
 0xf6f   :  { %v1296_v51 = vsel %vm501_vm4, %v2396_v32, 0.0  ;;  %v2398_v53 = vpop.eup %2397 }
 0xf70   :  { %1297 = vadd.xlane.f32.xlu0 %v1296_v51  ;;  %v1290_v54 = vsel %vm501_vm4, %v2398_v53, 0.0 }
 0xf72   :  { %v3248_v55 = vpop.eup %2399 }
 0xf73   :  { %v1305_v56 = vsel %vm501_vm4, %v3248_v55, 0.0  ;;  %v2402_v57 = vpop.eup %2401 }
 0xf74   :  { %1291 = vadd.xlane.f32.xlu0 %v1290_v54  ;;  %1306 = vadd.xlane.f32.xlu1 %v1305_v56  ;;  %v1299_v61 = vsel %vm501_vm4, %v2402_v57, 0.0 }
 0xf76   :  { %v2404_v58 = vpop.eup %2403 }
 0xf77   :  { %v1308_v59 = vsel %vm501_vm4, %v2404_v58, 0.0  ;;  %v2406_v60 = vpop.eup %2405 }
 0xf78   :  { %1309 = vadd.xlane.f32.xlu0 %v1308_v59  ;;  %1300 = vadd.xlane.f32.xlu1 %v1299_v61  ;;  %v1302_v0 = vsel %vm501_vm4, %v2406_v60, 0.0 }
 0xf7c   :  { %1303 = vadd.xlane.f32.xlu0 %v1302_v0  ;;  %v2001_v0 = vld [vmem:[#allocation11 + $0x1] ss:$0 sm:$0xff] }
 0xf89   :  { %1333 = vrot.lane.b32.xlu1 %v3203_v31, %s2768_s2 }
 0xf8d   :  { %1331 = vrot.lane.b32.xlu1 %v3191_v40, %s2768_s2 }
 0xf92   :  { %1335 = vrot.lane.b32.xlu0 %v3196_v42, %s2768_s2 }
 0xfef   :  { %v1295_v1 = vpop.xlane.xlu1 %1294 }
 0xff3   :  { %v1289_v2 = vpop.xlane.xlu1 %1288 }
 0xff4   :  { %2407 = vrcp.f32 %v1289_v2 }
 0xff9   :  { %v1298_v4 = vpop.xlane.xlu0 %1297 }
 0xffd   :  { %v1292_v5 = vpop.xlane.xlu0 %1291  ;;  %v1307_v7 = vpop.xlane.xlu1 %1306 }
 0xffe   :  { %2409 = vrcp.f32 %v1292_v5 }
 0xfff   :  { %2411 = vrcp.f32 %v1298_v4 }
0x1000   :  { %2413 = vrcp.f32 %v1295_v1 }
0x1001   :  { %v1310_v8 = vpop.xlane.xlu0 %1309  ;;  %v1301_v63 = vpop.xlane.xlu1 %1300 }
0x1002   :  { %2415 = vrcp.f32 %v1301_v63  ;;  %v2408_v31 = vpop.eup %2407 }
0x1003   :  { %v1312_v10 = vmul.f32 %v2408_v31, %v2394_v44 }
0x1005   :  { %v1304_v62 = vpop.xlane.xlu0 %1303  ;;  %v1334_v40 = vpop.permute.xlu1 %1333 }
0x1006   :  { %2417 = vrcp.f32 %v1304_v62 }
0x1007   :  { %2419 = vrcp.f32 %v1310_v8 }
0x1008   :  { %2421 = vrcp.f32 %v1307_v7 }
0x1009   :  { %v1336_v9 = vpop.permute.xlu0 %1335  ;;  %v1332_v13 = vpop.permute.xlu1 %1331 }
0x100a   :  { %2195 = vmatprep.subr.bf16.mxu0 %v1336_v9 }
0x100b   :  { %v2410_v42 = vpop.eup %2409  ;;  %2196 = vmatpush3.bf16.msra.mxu0 %v1336_v9 }
0x100c   :  { %2197 = vmatprep.subr.bf16.mxu0 %v1334_v40  ;;  %v1314_v11 = vmul.f32 %v2410_v42, %v2398_v53  ;;  %v2412_v12 = vpop.eup %2411 }
0x100d   :  { %v2414_v6 = vpop.eup %2413  ;;  %v1318_v16 = vmul.f32 %v2412_v12, %v2396_v32 }
0x100e   :  { %v1327_v3 = vpack.c.bf16 %v1314_v11, %v1312_v10  ;;  %v1316_v20 = vmul.f32 %v2414_v6, %v3242_v36 }
0x100f   :  { %2198 = vmatpush3.bf16.msra.mxu0 %v1334_v40  ;;  %v2416_v14 = vpop.eup %2415 }
0x1010   :  { %2199 = vmatprep.subr.bf16.mxu0 %v1332_v13  ;;  %2201 = vmatprep.mubr.msk.bf16.mxu0 %vm501_vm4, %v1327_v3  ;;  %v1328_v50 = vpack.c.bf16 %v1318_v16, %v1316_v20  ;;  %v1320_v18 = vmul.f32 %v2416_v14, %v2402_v57  ;;  %v2333_v14 = vld [vmem:[#allocation16 + $0x18] sm:$0xff]  }
0x1013   :  { %v2418_v47 = vpop.eup %2417  ;;  %2200 = vmatpush3.bf16.msra.mxu0 %v1332_v13 }
0x1014   :  { %v1322_v45 = vmul.f32 %v2418_v47, %v2406_v60  ;;  %2209 = vmatprep.subr.bf16.mxu0 %v2775_v15  ;;  %v2420_v17 = vpop.eup %2419 }
0x1015   :  { %v2422_v19 = vpop.eup %2421  ;;  %v1326_v22 = vmul.f32 %v2420_v17, %v2404_v58 }
0x1016   :  { %2202 = vmatmul.mubr.msk.bf16.vlgmr.msra.gmra.mxu0 %vm501_vm4, %v1328_v50  ;;  %v1329_v21 = vpack.c.bf16 %v1322_v45, %v1320_v18  ;;  %v1324_v25 = vmul.f32 %v2422_v19, %v3248_v55 }
0x1017   :  { %2210 = vmatpush3.bf16.msra.mxu0 %v2331_v27 }
0x1018   :  { %2205 = vmatprep.mubr.msk.bf16.mxu0 %vm501_vm4, %v1329_v21  ;;  %v1330_v26 = vpack.c.bf16 %v1326_v22, %v1324_v25  ;;  %2211 = vmatprep.subr.bf16.mxu0 %v2775_v15  ;;  %v2005_v22 = vld [vmem:[#allocation13 + $0x1] ss:$0 sm:$0xff] }
0x101b   :  { %2212 = vmatpush3.bf16.msra.mxu0 %v2332_v52 }
0x101c   :  { %2217 = vmatprep.subr.bf16.mxu0 %v2775_v15 }
0x101e   :  { %2206 = vmatmul.mubr.msk.bf16.gmra.mxu0 %vm501_vm4, %v1330_v26 }
0x101f   :  { %2213 = vmatprep.mubr.msk.bf16.mxu0 %vm2776_vm1, %v2775_v15 }
0x10d6   :  { %v2203_v28 = vpop.f32.mrf.mxu0 }
0x10d8   :  { %v1389_v29 = vpop.f32.mrf.mxu0 }
0x10da   :  { %v2204_v30 = vpop.f32.mrf.mxu0 }
0x10dc   :  { %v1392_v33 = vpop.f32.mrf.mxu0 }
0x10de   :  { %v2207_v34 = vpop.f32.mrf.mxu0 }
0x10df   :  { %v2304_v35 = vpack.i.bf16 %v2207_v34, %v2203_v28  ;;  %v2006_v28 = vld [vmem:[#allocation14 + $0x1] ss:$0 sm:$0xff] }
0x10e0   :  { %v1405_v36 = vpop.f32.mrf.mxu0  ;;  %v2335_v34 = vld [vmem:[%s3353_s12 + $0x38] sm:$0xff]  }
0x10e1   :  { %2305 = vrot.lane.b32.xlu0 %v2304_v35, %s2757_s4  ;;  %2226 = vmatpush3.bf16.msra.mxu1 %v2335_v34  ;;  %v2336_v35 = vld [vmem:[%s3353_s12 + $0x30] sm:$0xff]  }
0x10e2   :  { %v2208_v37 = vpop.f32.mrf.mxu0  ;;  %2227 = vmatprep.subr.bf16.mxu1 %v2775_v15 }
0x10e3   :  { %v2314_v41 = vpack.i.bf16 %v2208_v37, %v2204_v30  ;;  %v2338_v37 = vld [vmem:[%s3353_s12 + $0x20] sm:$0xff]  }
0x10e4   :  { %v1408_v38 = vpop.f32.mrf.mxu0 }
0x10e5   :  { %v2309_v39 = vpack.i.bf16 %v1408_v38, %v1392_v33  ;;  %2228 = vmatpush3.bf16.msra.mxu1 %v2336_v35  ;;  %v2007_v38 = vld [vmem:[#allocation17 + $0x1] ss:$0 sm:$0xff] }
0x10e6   :  { %2229 = vmatprep.subr.bf16.mxu1 %v2775_v15 }
0x10e7   :  { %2310 = vrot.lane.b32.xlu1 %v2309_v39, %s2765_s5 }
0x10eb   :  { %2315 = vrot.lane.b32.xlu1 %v2314_v41, %s2781_s6 }
0x1153   :  { %v2306_v44 = vpop.permute.xlu0 %2305 }
0x1154   :  { %v2308_v51 = vunpack.i.h.bf16 %v2306_v44  ;;  %v2307_v53 = vunpack.i.l.bf16 %v2306_v44 }
0x1159   :  { %v2311_v43 = vpop.permute.xlu1 %2310 }
0x115a   :  { %v2313_v46 = vunpack.i.h.bf16 %v2311_v43  ;;  %v2312_v48 = vunpack.i.l.bf16 %v2311_v43 }
0x115c   :  { %v1447_v49 = vsel %vm415_vm3, %v1405_v36, %v2313_v46  ;;  %v1432_v32 = vsel %vm415_vm3, %v1389_v29, %v2312_v48  ;;  %v2337_v36 = vld [vmem:[%s3353_s12 + $0x28] sm:$0xff]  }
0x115d   :  { %v2316_v55 = vpop.permute.xlu1 %2315  ;;  %v1433_v57 = vsel %vm696_vm5, %v1432_v32, %v2307_v53  ;;  %v1448_v58 = vsel %vm696_vm5, %v1447_v49, %v2308_v51  ;;  %2230 = vmatpush3.bf16.msra.mxu1 %v2337_v36 }
0x115e   :  { %v2318_v54 = vunpack.i.h.bf16 %v2316_v55  ;;  %v2317_v56 = vunpack.i.l.bf16 %v2316_v55  ;;  %2231 = vmatprep.subr.bf16.mxu1 %v2775_v15 }
0x1160   :  { %v1434_v59 = vsel %vm698_vm6, %v1433_v57, %v2317_v56  ;;  %v1449_v60 = vsel %vm698_vm6, %v1448_v58, %v2318_v54 }
0x1161   :  { %v1455_v61 = vpack.c.bf16 %v1449_v60, %v1434_v59  ;;  %2232 = vmatpush3.bf16.msra.mxu1 %v2338_v37  ;;  %v2026_v37 = vld [vmem:[#allocation22 + $0x1] ss:$0 sm:$0xff] }
0x1162   :  { %2245 = vmatprep.subr.bf16.mxu1 %v2775_v15 }
0x1163   :  { %2214 = vmatmul.mubr.msk.bf16.vlgmr.msra.gmra.mxu0 %vm255_vm0, %v1455_v61 }
0x1164   :  { %2221 = vmatprep.mubr.msk.bf16.mxu0 %vm2776_vm1, %v2775_v15  ;;  %2218 = vmatpush3.bf16.msra.mxu0 %v2333_v14 }
0x1165   :  { %2219 = vmatprep.subr.bf16.mxu0 %v2775_v15 }
0x1223   :  { %v1513_v1 = vpop.f32.mrf.mxu0 }
0x1224   :  { %v1514_v2 = vadd.f32 %v2001_v0, %v1513_v1 }
0x1225   :  { %v2215_v4 = vpop.f32.mrf.mxu0 }
0x1226   :  { %v1520_v5 = vadd.f32 %v1514_v2, %v3172_v23 }
0x1227   :  { %v1516_v7 = vpop.f32.mrf.mxu0 }
0x1228   :  { %v1517_v8 = vadd.f32 %v2001_v0, %v1516_v7  ;;  %v1526_v63 = vsel %vm255_vm0, %v1520_v5, 0.0 }
0x1229   :  { %1527 = vadd.xlane.f32.xlu0 %v1526_v63  ;;  %v2216_v62 = vpop.f32.mrf.mxu0  ;;  %v2019_v63 = vld [vmem:[#allocation19 + $0x1] ss:$0 sm:$0xff] }
0x122a   :  { %v1521_v31 = vadd.f32 %v1517_v8, %v3174_v24  ;;  %v2334_v24 = vld [vmem:[#allocation16 + $0x10] sm:$0xff]  }
0x122b   :  { %2220 = vmatpush3.bf16.msra.mxu0 %v2334_v24 }
0x122c   :  { %v1529_v40 = vsel %vm255_vm0, %v1521_v31, 0.0  ;;  %2237 = vmatprep.subr.bf16.mxu0 %v2775_v15 }
0x122d   :  { %1530 = vadd.xlane.f32.xlu1 %v1529_v40 }
0x12b2   :  { %v1528_v9 = vpop.xlane.xlu0 %1527 }
0x12b3   :  { %v1532_v42 = vmul.f32 0.03125, %v1528_v9 }
0x12b5   :  { %v1534_v10 = vsub.f32 %v1520_v5, %v1532_v42 }
0x12b6   :  { %v1531_v11 = vpop.xlane.xlu1 %1530 }
0x12b7   :  { %v1533_v12 = vmul.f32 0.03125, %v1531_v11  ;;  %v1536_v3 = vmul.f32 %v1534_v10, %v1534_v10 }
0x12b9   :  { %v1535_v6 = vsub.f32 %v1521_v31, %v1533_v12  ;;  %v1538_v23 = vsel %vm255_vm0, %v1536_v3, 0.0 }
0x12ba   :  { %1539 = vadd.xlane.f32.xlu0 %v1538_v23 }
0x12bb   :  { %v1537_v13 = vmul.f32 %v1535_v6, %v1535_v6 }
0x12bd   :  { %v1541_v16 = vsel %vm255_vm0, %v1537_v13, 0.0 }
0x12be   :  { %1542 = vadd.xlane.f32.xlu0 %v1541_v16 }
0x1343   :  { %v1540_v20 = vpop.xlane.xlu0 %1539 }
0x1344   :  { %v1544_v47 = vmul.f32 0.03125, %v1540_v20 }
0x1346   :  { %v1546_v50 = vadd.f32 1e-12, %v1544_v47 }
0x1347   :  { %v1543_v18 = vpop.xlane.xlu0 %1542 }
0x1348   :  { %2423 = vrsqrt.f32 %v1546_v50  ;;  %v1545_v45 = vmul.f32 0.03125, %v1543_v18 }
0x134a   :  { %v1547_v17 = vadd.f32 1e-12, %v1545_v45 }
0x134c   :  { %2425 = vrsqrt.f32 %v1547_v17  ;;  %v2339_v17 = vld [vmem:[%s3357_s16 + $0x8] sm:$0xff]  }
0x1355   :  { %v2424_v21 = vpop.eup %2423 }
0x1356   :  { %v1550_v19 = vmul.f32 %v2424_v21, %v1534_v10  ;;  %v2340_v21 = vld [vmem:[%s3357_s16] sm:$0xff]  }
0x1358   :  { %v1558_v27 = vmul.f32 %v2005_v22, %v1550_v19 }
0x1359   :  { %v2426_v25 = vpop.eup %2425 }
0x135a   :  { %v1551_v26 = vmul.f32 %v2426_v25, %v1535_v6  ;;  %v1566_v30 = vadd.f32 %v2006_v28, %v1558_v27 }
0x135c   :  { %v1559_v29 = vmul.f32 %v2005_v22, %v1551_v26 }
0x135e   :  { %v1567_v33 = vadd.f32 %v2006_v28, %v1559_v29 }
0x1360   :  { %v1573_v52 = vpack.c.bf16 %v1567_v33, %v1566_v30 }
0x1362   :  { %2222 = vmatmul.mubr.msk.bf16.vlgmr.msra.gmra.mxu0 %vm255_vm0, %v1573_v52  ;;  %v2025_v52 = vld [vmem:[#allocation20 + $0x1] ss:$0 sm:$0xff] }
0x1363   :  { %2241 = vmatprep.mubr.msk.bf16.mxu0 %vm2776_vm1, %v2775_v15  ;;  %2238 = vmatpush3.bf16.msra.mxu0 %v2339_v17 }
0x1364   :  { %2239 = vmatprep.subr.bf16.mxu0 %v2775_v15 }
0x1367   :  { %2240 = vmatpush3.bf16.msra.mxu0 %v2340_v21 }
0x1422   :  { %v1631_v39 = vpop.f32.mrf.mxu0 }
0x1423   :  { %v1632_v41 = vadd.f32 %v2007_v38, %v1631_v39 }
0x1424   :  { %v2223_v43 = vpop.f32.mrf.mxu0 }
0x1425   :  { %v1638_v44 = vmul.f32 %v1632_v41, %v1632_v41 }
0x1426   :  { %v1634_v46 = vpop.f32.mrf.mxu0 }
0x1427   :  { %v1640_v48 = vmul.f32 %v1638_v44, %v1632_v41  ;;  %v1635_v49 = vadd.f32 %v2007_v38, %v1634_v46  ;;  %v2341_v46 = vld [vmem:[%s3359_s18 + $0x8] sm:$0xff]  }
0x1428   :  { %v2224_v32 = vpop.f32.mrf.mxu0 }
0x1429   :  { %v1642_v51 = vmul.f32 0.044715, %v1640_v48  ;;  %v1639_v53 = vmul.f32 %v1635_v49, %v1635_v49  ;;  %v2342_v48 = vld [vmem:[%s3359_s18] sm:$0xff]   ;;  %s2717_s18 = scalar_lea.vmem %s1938_s3, 32 }
0x142a   :  { %p2718_p0 = scmp.ne.s32.totalorder %s1938_s3, %s2717_s18  ;;  %p2723_p2 = scmp.lt.s32.totalorder %s2717_s18, %s2717_s18 }
0x142b   :  { %v1644_v55 = vadd.f32 %v1642_v51, %v1632_v41  ;;  %v1641_v54 = vmul.f32 %v1639_v53, %v1635_v49 }
0x142c   :  { %p2724_p3 = por %p2723_p2, %p2722_p1 }
0x142d   :  { %v1646_v56 = vmul.f32 0.7978846, %v1644_v55  ;;  %v1643_v57 = vmul.f32 0.044715, %v1641_v54 }
0x142e   :  { %p2725_p4 = pnand %p2724_p3, %p2718_p0 }
0x142f   :  { %2427 = vtanh.f32 %v1646_v56  ;;  %v1645_v58 = vadd.f32 %v1643_v57, %v1635_v49 }
0x1431   :  { %v1647_v59 = vmul.f32 0.7978846, %v1645_v58 }
0x1433   :  { %2429 = vtanh.f32 %v1647_v59 }
0x143c   :  { %v2428_v60 = vpop.eup %2427 }
0x143d   :  { %v1650_v61 = vadd.f32 1.0, %v2428_v60 }
0x143f   :  { %v1652_v1 = vmul.f32 0.5, %v1650_v61 }
0x1440   :  { %v2430_v0 = vpop.eup %2429 }
0x1441   :  { %v1651_v2 = vadd.f32 1.0, %v2430_v0  ;;  %v1654_v5 = vmul.f32 %v1652_v1, %v1632_v41 }
0x1443   :  { %v1653_v4 = vmul.f32 0.5, %v1651_v2 }
0x1445   :  { %v1655_v7 = vmul.f32 %v1653_v4, %v1635_v49  ;;  %v2027_v49 = vld [vmem:[#allocation23] ss:$0 sm:$0xff] }
0x1447   :  { %v1665_v8 = vpack.c.bf16 %v1655_v7, %v1654_v5 }
0x1449   :  { %2234 = vmatmul.mubr.msk.bf16.vlgmr.msra.gmra.mxu1 %vm501_vm4, %v1665_v8 }
0x144a   :  { %2249 = vmatprep.mubr.msk.bf16.mxu1 %vm2776_vm1, %v2775_v15  ;;  %2246 = vmatpush3.bf16.msra.mxu1 %v2341_v46 }
0x144b   :  { %2247 = vmatprep.subr.bf16.mxu1 %v2775_v15  ;;  %v2031_v15 = vld [vmem:[%s3360_s19] ss:$0 sm:$0xff] }
0x144e   :  { %2248 = vmatpush3.bf16.msra.mxu1 %v2342_v48 }
0x1509   :  { %v1735_v62 = vpop.f32.mrf.mxu1 }
0x150a   :  { %v1736_v31 = vadd.f32 %v2019_v63, %v1735_v62 }
0x150b   :  { %v2235_v40 = vpop.f32.mrf.mxu1 }
0x150c   :  { %v1742_v9 = vadd.f32 %v1736_v31, %v1566_v30 }
0x150d   :  { %v1738_v42 = vpop.f32.mrf.mxu1 }
0x150e   :  { %v1739_v10 = vadd.f32 %v2019_v63, %v1738_v42  ;;  %v1748_v11 = vsel %vm255_vm0, %v1742_v9, 0.0 }
0x150f   :  { %1749 = vadd.xlane.f32.xlu1 %v1748_v11  ;;  %v2236_v12 = vpop.f32.mrf.mxu1 }
0x1510   :  { %v1743_v3 = vadd.f32 %v1739_v10, %v1567_v33 }
0x1512   :  { %v1751_v6 = vsel %vm255_vm0, %v1743_v3, 0.0 }
0x1513   :  { %1752 = vadd.xlane.f32.xlu0 %v1751_v6 }
0x1598   :  { %v1750_v23 = vpop.xlane.xlu1 %1749 }
0x1599   :  { %v1754_v13 = vmul.f32 0.03125, %v1750_v23 }
0x159b   :  { %v1756_v16 = vsub.f32 %v1742_v9, %v1754_v13 }
0x159c   :  { %v1753_v14 = vpop.xlane.xlu0 %1752 }
0x159d   :  { %v1755_v24 = vmul.f32 0.03125, %v1753_v14  ;;  %v1758_v20 = vmul.f32 %v1756_v16, %v1756_v16 }
0x159f   :  { %v1757_v47 = vsub.f32 %v1743_v3, %v1755_v24  ;;  %v1760_v50 = vsel %vm255_vm0, %v1758_v20, 0.0 }
0x15a0   :  { %1761 = vadd.xlane.f32.xlu1 %v1760_v50 }
0x15a1   :  { %v1759_v18 = vmul.f32 %v1757_v47, %v1757_v47 }
0x15a3   :  { %v1763_v45 = vsel %vm255_vm0, %v1759_v18, 0.0 }
0x15a4   :  { %1764 = vadd.xlane.f32.xlu0 %v1763_v45 }
0x1629   :  { %v1762_v19 = vpop.xlane.xlu1 %1761 }
0x162a   :  { %v1766_v22 = vmul.f32 0.03125, %v1762_v19 }
0x162c   :  { %v1768_v25 = vadd.f32 1e-12, %v1766_v22 }
0x162d   :  { %v1765_v26 = vpop.xlane.xlu0 %1764 }
0x162e   :  { %2431 = vrsqrt.f32 %v1768_v25  ;;  %v1767_v27 = vmul.f32 0.03125, %v1765_v26 }
0x1630   :  { %v1769_v28 = vadd.f32 1e-12, %v1767_v27 }
0x1632   :  { %2433 = vrsqrt.f32 %v1769_v28 }
0x163b   :  { %v2432_v29 = vpop.eup %2431 }
0x163c   :  { %v1772_v30 = vmul.f32 %v2432_v29, %v1756_v16 }
0x163e   :  { %v1780_v35 = vmul.f32 %v2025_v52, %v1772_v30 }
0x163f   :  { %v2434_v33 = vpop.eup %2433 }
0x1640   :  { %v1773_v34 = vmul.f32 %v2434_v33, %v1757_v47  ;;  %v1788_v39 = vadd.f32 %v2026_v37, %v1780_v35 }
0x1642   :  { %v1781_v36 = vmul.f32 %v2025_v52, %v1773_v34 }
0x1644   :  { %v1789_v38 = vadd.f32 %v2026_v37, %v1781_v36 }
0x1646   :  { %v1791_v41 = vrot.slane %v1789_v38, 7 }
0x1648   :  { %v1794_v43 = vsel %vm1793_vm7, %v1788_v39, %v1791_v41 }
0x1649   :  { %v1799_v44 = vpack.c.bf16 %v1794_v43, %v1794_v43 }
0x164b   :  { %2242 = vmatmul.mubr.msk.bf16.vlgmr.msra.gmra.mxu0 %vm255_vm0, %v1799_v44 }
0x170b   :  { %v1856_v32 = vpop.f32.mrf.mxu0 }
0x170c   :  { %v1857_v51 = vadd.f32 %v2027_v49, %v1856_v32 }
0x170d   :  { %v2243_v53 = vpop.f32.mrf.mxu0 }
0x170e   :  { %2435 = vtanh.f32 %v1857_v51 }
0x170f   :  { %v1859_v55 = vpop.f32.mrf.mxu0 }
0x1711   :  { %v2244_v54 = vpop.f32.mrf.mxu0 }
0x171b   :  { %v2436_v56 = vpop.eup %2435 }
0x171c   :  { %v1867_v57 = vpack.c.bf16 %v2436_v56, %v2436_v56 }
0x171e   :  { %2250 = vmatmul.mubr.msk.bf16.vlgmr.msra.gmra.mxu1 %vm255_vm0, %v1867_v57 }
0x17de   :  { %v1924_v58 = vpop.f32.mrf.mxu1 }
0x17df   :  { %v1925_v59 = vadd.f32 %v2031_v15, %v1924_v58 }
0x17e0   :  { %v2251_v60 = vpop.f32.mrf.mxu1 }
0x17e1   :  { %1930 = vst [vmem:[#allocation25] sm:$0x3] %v1925_v59 }
0x17e2   :  { %v1927_v61 = vpop.f32.mrf.mxu1 }
0x17e3   :  { %2728 = shalt.err (!%p2725_p4)
}
0x17e4   :  { %1940 = dma.vmem_to_hbm [thread:$0]  %s1938_s3, 32, %s3361_s20, [#allocation4]   ;;  %v2252_v0 = vpop.f32.mrf.mxu1 }
0x17e5   :  { %2753 = dma.done.wait [#allocation4], 32  }
0x17e6   :  { %2754 = vsyncadd [#allocation4], 4294967264 }
0x17e7   :  { %1944 = vsyncpa [#allocation3], 1 }
0x17e8   :  { %1945 = vsyncpa [#allocation6], 1 }
0x17e9   :  { %1946 = vsyncpa [#allocation9], 1 }
0x17ea   :  { %1947 = vsyncpa [#allocation12], 1 }
0x17eb   :  { %1948 = vsyncpa [#allocation15], 1 }
0x17ec   :  { %1949 = vsyncpa [#allocation18], 1 }
0x17ed   :  { %1950 = vsyncpa [#allocation21], 1 }
0x17ee   :  { %1951 = vsyncpa [#allocation24], 1 }
0x17ef   :  { %1952 = vsyncpa [#allocation4], 1 }

</bundles_post_ra>
